<compile_context>
chip_gen: v6e
topology: v6e:2x2x1
jax: 0.10.0
libtpu: 0.0.40
codegen_flags: <defaults>
</compile_context>

<pallas_src>
import math

import jax
import jax.numpy as jnp
from jax.experimental import pallas as pl
from jax.experimental.pallas import tpu as pltpu

BN_EPS = 1e-5
LANE = 128


def _round_up(x, m):
    return (x + m - 1) // m * m


def _prefer_narrow_tn():
    """v5e's MXU is 4x(128x128); prefer 128-wide Cout tiles there (256 elsewhere)."""
    try:
        kind = jax.devices()[0].device_kind.lower()
    except Exception:
        return False
    return ("v5 lite" in kind) or ("v5e" in kind) or ("v5lite" in kind)


def _pick_tm(m_pad, n_other, bytes_per_row, budget=4 << 20):
    """Largest row tile that divides m_pad, fits the per-block byte budget and keeps
    at least 2 blocks across the parallel axes (both v7x TensorCores busy)."""
    cands = (1024, 512, 256, 128, 64, 32, 16, 8)
    for c in cands:
        if m_pad % c == 0 and c * bytes_per_row <= budget and (m_pad // c) * n_other >= 2:
            return c
    for c in cands:
        if m_pad % c == 0 and c * bytes_per_row <= budget:
            return c
    return 8


# ----------------------------------------------------------------------------- kernels
def _conv_bn_stats_kernel(p_ref, w_ref, z_ref, s_ref, ss_ref):
    """Full-K MXU matmul (bf16 x bf16 -> f32) + per-(M-tile, Cout-tile) BN partials.

    z is written back in bf16 (halves the z HBM roundtrip); the statistics are taken
    from the f32 product before the downcast, so they stay f32-exact.
    """
    z = jnp.dot(p_ref[...], w_ref[...], preferred_element_type=jnp.float32)
    z_ref[...] = z.astype(z_ref.dtype)
    s = jnp.sum(z, axis=0, keepdims=True)          # (1, tn) partial sum
    ss = jnp.sum(z * z, axis=0, keepdims=True)     # (1, tn) partial sum of squares
    # Write 8 identical sublane rows -> (8, tn) sublane/lane-dense store; row 0 is used.
    s_ref[...] = jnp.broadcast_to(s, s_ref.shape)
    ss_ref[...] = jnp.broadcast_to(ss, ss_ref.shape)


def _bn_relu_kernel(z_ref, scale_ref, shift_ref, o_ref):
    """y = max(z*scale + shift, 0); bf16 z upcast on load, math in f32."""
    z = z_ref[...].astype(jnp.float32)
    y = jnp.maximum(z * scale_ref[...] + shift_ref[...], 0.0)
    o_ref[...] = y.astype(o_ref.dtype)


# ----------------------------------------------------------------------------- wrappers
def _conv_matmul(patches, wm, m_pad, k_pad, c_pad, tn):
    n_n = c_pad // tn
    tm = _pick_tm(m_pad, n_n, bytes_per_row=k_pad * 2)
    n_m = m_pad // tm

    z, psum, psumsq = pl.pallas_call(
        _conv_bn_stats_kernel,
        out_shape=(
            jax.ShapeDtypeStruct((m_pad, c_pad), jnp.bfloat16),      # z (pre-BN, bf16)
            jax.ShapeDtypeStruct((8 * n_m, c_pad), jnp.float32),     # partial sums
            jax.ShapeDtypeStruct((8 * n_m, c_pad), jnp.float32),     # partial sums^2
        ),
        grid=(n_m, n_n),
        in_specs=[
            pl.BlockSpec((tm, k_pad), lambda i, j: (i, 0)),          # patches (bf16)
            pl.BlockSpec((k_pad, tn), lambda i, j: (0, j)),          # weights (bf16)
        ],
        out_specs=(
            pl.BlockSpec((tm, tn), lambda i, j: (i, j)),
            pl.BlockSpec((8, tn), lambda i, j: (i, j)),
            pl.BlockSpec((8, tn), lambda i, j: (i, j)),
        ),
        compiler_params=pltpu.CompilerParams(
            dimension_semantics=("parallel", "parallel"),
        ),
    )(patches, wm)
    return z, psum, psumsq, n_m


def _bn_relu(z, scale, shift, out_dtype):
    m_pad, c_pad = z.shape
    out_bytes = 2 if out_dtype == jnp.bfloat16 else 4
    tm = _pick_tm(m_pad, 1, bytes_per_row=c_pad * (2 + out_bytes))
    n_m = m_pad // tm
    # In-place z -> y when dtypes match (layer 1): saves a second full-size buffer.
    alias = {0: 0} if out_dtype == jnp.bfloat16 else {}
    return pl.pallas_call(
        _bn_relu_kernel,
        out_shape=jax.ShapeDtypeStruct((m_pad, c_pad), out_dtype),
        grid=(n_m,),
        in_specs=[
            pl.BlockSpec((tm, c_pad), lambda i: (i, 0)),     # full channel width
            pl.BlockSpec((1, c_pad), lambda i: (0, 0)),      # scale (constant block)
            pl.BlockSpec((1, c_pad), lambda i: (0, 0)),      # shift (constant block)
        ],
        out_specs=pl.BlockSpec((tm, c_pad), lambda i: (i, 0)),
        input_output_aliases=alias,
        compiler_params=pltpu.CompilerParams(dimension_semantics=("parallel",)),
    )(z, scale, shift)


def conv3x3_bn_relu(x, w, gamma, beta, *, out_dtype=jnp.float32):
    """x: (N, H, W, Cin); w: (3, 3, Cin, Cout); gamma/beta: (Cout,). Bias omitted —
    it cancels exactly under train-mode BatchNorm."""
    N, H, W, Cin = x.shape
    Cout = w.shape[-1]
    M = N * H * W
    K = 9 * Cin
    K_pad = _round_up(K, 16)          # only bf16-sublane alignment, NOT 128
    C_pad = _round_up(Cout, LANE)
    M_pad = _round_up(M, 256)         # zero rows; contribute nothing to BN sums

    # im2col glue in bf16 (layer-2 input already arrives bf16, so this is a no-op cast).
    xp = jnp.pad(x.astype(jnp.bfloat16), ((0, 0), (1, 1), (1, 1), (0, 0)))
    cols = [xp[:, dy:dy + H, dx:dx + W, :] for dy in range(3) for dx in range(3)]
    patches = jnp.concatenate(cols, axis=-1).reshape(M, K)
    patches = jnp.pad(patches, ((0, M_pad - M), (0, K_pad - K)))

    wm = jnp.pad(w.reshape(K, Cout).astype(jnp.bfloat16),
                 ((0, K_pad - K), (0, C_pad - Cout)))

    tn = 128 if (_prefer_narrow_tn() or C_pad % 256 != 0) else 256

    z, psum, psumsq, n_m = _conv_matmul(patches, wm, M_pad, K_pad, C_pad, tn)

    # Finalize train-mode BatchNorm statistics (tiny per-channel math, f32).
    sums = jnp.sum(psum.reshape(n_m, 8, C_pad)[:, 0, :], axis=0)
    sumsq = jnp.sum(psumsq.reshape(n_m, 8, C_pad)[:, 0, :], axis=0)
    mean = sums / M
    var = jnp.maximum(sumsq / M - mean * mean, 0.0)   # biased var (PyTorch BN training)
    g = jnp.pad(gamma.astype(jnp.float32), (0, C_pad - Cout))
    be = jnp.pad(beta.astype(jnp.float32), (0, C_pad - Cout))
    scale = g * jax.lax.rsqrt(var + BN_EPS)
    shift = be - mean * scale

    y = _bn_relu(z, scale.reshape(1, C_pad), shift.reshape(1, C_pad), out_dtype)
    return y[:M, :Cout].reshape(N, H, W, Cout)


# ----------------------------------------------------------------------------- module
def conv_block_fwd(params, x_nchw):
    x = jnp.transpose(x_nchw, (0, 2, 3, 1))
    w1, _b1, g1, be1 = params["c1"]   # conv biases cancel under train-mode BN
    w2, _b2, g2, be2 = params["c2"]
    # Layer-1 output stays bf16 and feeds layer-2's bf16 im2col directly.
    x = conv3x3_bn_relu(x, w1, g1, be1, out_dtype=jnp.bfloat16)
    x = conv3x3_bn_relu(x, w2, g2, be2, out_dtype=jnp.float32)
    return jnp.transpose(x, (0, 3, 1, 2))


# ----------------------------------------------------------------------------- reference
def _ref_conv_bn_relu(x, w, b, g, beta):
    z = jax.lax.conv_general_dilated(
        x, w, (1, 1), "SAME", dimension_numbers=("NHWC", "HWIO", "NHWC"))
    z = z + b
    mean = jnp.mean(z, axis=(0, 1, 2))
    var = jnp.mean((z - mean) ** 2, axis=(0, 1, 2))
    z = (z - mean) * jax.lax.rsqrt(var + BN_EPS) * g + beta
    return jnp.maximum(z, 0.0)


def conv_block_ref(params, x_nchw):
    x = jnp.transpose(x_nchw, (0, 2, 3, 1)).astype(jnp.float32)
    for name in ("c1", "c2"):
        w, b, g, be = params[name]
        x = _ref_conv_bn_relu(x, w, b, g, be)
    return jnp.transpose(x, (0, 3, 1, 2))


# ----------------------------------------------------------------------------- init
def _conv_init(key, cin, cout, k):
    fan_in = cin * k * k
    bound = 1.0 / math.sqrt(fan_in)
    kw, kb = jax.random.split(key)
    w = jax.random.uniform(kw, (k, k, cin, cout), jnp.float32, -bound, bound)
    b = jax.random.uniform(kb, (cout,), jnp.float32, -bound, bound)
    return w, b


def init_conv_block_params(key, ch_in, ch_out):
    k1, k2 = jax.random.split(key)
    w1, b1 = _conv_init(k1, ch_in, ch_out, 3)
    w2, b2 = _conv_init(k2, ch_out, ch_out, 3)
    ones = jnp.ones((ch_out,), jnp.float32)
    zeros = jnp.zeros((ch_out,), jnp.float32)
    return {"c1": (w1, b1, ones, zeros), "c2": (w2, b2, ones, zeros)}


# ----------------------------------------------------------------------------- main
if __name__ == "__main__":
    key = jax.random.PRNGKey(0)
    k_par, k_x = jax.random.split(key)

    N, CH_IN, CH_OUT, S = 2, 4, 32, 16
    params = init_conv_block_params(k_par, CH_IN, CH_OUT)
    x = jax.random.normal(k_x, (N, CH_IN, S, S), jnp.float32)

    fwd = jax.jit(conv_block_fwd)
    y = fwd(params, x)
    jax.block_until_ready(y)

    assert y.shape == (N, CH_OUT, S, S)
    assert y.dtype == jnp.float32
    assert bool(jnp.all(jnp.isfinite(y)))
    assert bool(jnp.all(y >= 0.0))          # ReLU output

    # Loose-tolerance check vs a pure-JAX f32 reference (kernel matmuls and the z / y
    # intermediates run in bf16; reference includes the conv bias, which cancels).
    y_ref = jax.jit(conv_block_ref)(params, x)
    err = float(jnp.max(jnp.abs(y - y_ref)))
    assert err < 0.15, f"mismatch vs reference: max abs err {err}"

    print("KERNEL_OK")
</pallas_src>

<mosaic_0001>
module attributes {stable_mosaic.version = 11 : i64} {
  func.func @_conv_bn_stats_kernel(%arg0: i32, %arg1: i32, %arg2: memref<256x48xbf16, #tpu.memory_space<vmem>>, %arg3: memref<48x128xbf16, #tpu.memory_space<vmem>>, %arg4: memref<256x128xbf16, #tpu.memory_space<vmem>>, %arg5: memref<8x128xf32, #tpu.memory_space<vmem>>, %arg6: memref<8x128xf32, #tpu.memory_space<vmem>>) attributes {dimension_semantics = [#tpu.dimension_semantics<parallel>, #tpu.dimension_semantics<parallel>], iteration_bounds = array<i64: 2, 1>, scalar_prefetch = 0 : i64, scratch_operands = 0 : i64, tpu.core_type = #tpu.core_type<tc>, window_params = [{transform_indices = @transform_0, window_bounds = array<i64: 256, 48>}, {transform_indices = @transform_1, window_bounds = array<i64: 48, 128>}, {transform_indices = @transform_2, window_bounds = array<i64: 256, 128>}, {transform_indices = @transform_3, window_bounds = array<i64: 8, 128>}, {transform_indices = @transform_4, window_bounds = array<i64: 8, 128>}]} {
    %c0 = arith.constant 0 : index
    %c0_0 = arith.constant 0 : index
    %0 = vector.load %arg2[%c0, %c0_0] : memref<256x48xbf16, #tpu.memory_space<vmem>>, vector<256x48xbf16>
    %c0_1 = arith.constant 0 : index
    %c0_2 = arith.constant 0 : index
    %1 = vector.load %arg3[%c0_1, %c0_2] : memref<48x128xbf16, #tpu.memory_space<vmem>>, vector<48x128xbf16>
    %cst = arith.constant dense<0.000000e+00> : vector<256x128xf32>
    %2 = tpu.matmul %0, %1, %cst {dimension_numbers = #tpu.dot_dimension_numbers<[1], [0], [0], [1], [0, 0, 1, 1], [], []>} : vector<256x48xbf16>, vector<48x128xbf16>, vector<256x128xf32> -> vector<256x128xf32>
    %3 = arith.truncf %2 : vector<256x128xf32> to vector<256x128xbf16>
    %c0_3 = arith.constant 0 : index
    %c0_4 = arith.constant 0 : index
    %4 = vector.load %arg4[%c0_3, %c0_4] : memref<256x128xbf16, #tpu.memory_space<vmem>>, vector<256x128xbf16>
    tpu.vector_store %arg4[%c0_3, %c0_4], %3 {strides = array<i32>} : memref<256x128xbf16, #tpu.memory_space<vmem>>, vector<256x128xbf16>,
    %cst_5 = arith.constant dense<0.000000e+00> : vector<128xf32>
    %5 = vector.multi_reduction <add>, %2, %cst_5 [0] : vector<256x128xf32> to vector<128xf32>
    %6 = vector.shape_cast %5 : vector<128xf32> to vector<1x128xf32>
    %7 = arith.mulf %2, %2 : vector<256x128xf32>
    %cst_6 = arith.constant dense<0.000000e+00> : vector<128xf32>
    %8 = vector.multi_reduction <add>, %7, %cst_6 [0] : vector<256x128xf32> to vector<128xf32>
    %9 = vector.shape_cast %8 : vector<128xf32> to vector<1x128xf32>
    %10 = vector.shape_cast %6 : vector<1x128xf32> to vector<1x128xf32>
    %11 = vector.broadcast %10 : vector<1x128xf32> to vector<8x128xf32>
    %c0_7 = arith.constant 0 : index
    %c0_8 = arith.constant 0 : index
    %12 = vector.load %arg5[%c0_7, %c0_8] : memref<8x128xf32, #tpu.memory_space<vmem>>, vector<8x128xf32>
    tpu.vector_store %arg5[%c0_7, %c0_8], %11 {strides = array<i32>} : memref<8x128xf32, #tpu.memory_space<vmem>>, vector<8x128xf32>,
    %13 = vector.shape_cast %9 : vector<1x128xf32> to vector<1x128xf32>
    %14 = vector.broadcast %13 : vector<1x128xf32> to vector<8x128xf32>
    %c0_9 = arith.constant 0 : index
    %c0_10 = arith.constant 0 : index
    %15 = vector.load %arg6[%c0_9, %c0_10] : memref<8x128xf32, #tpu.memory_space<vmem>>, vector<8x128xf32>
    tpu.vector_store %arg6[%c0_9, %c0_10], %14 {strides = array<i32>} : memref<8x128xf32, #tpu.memory_space<vmem>>, vector<8x128xf32>,
    return
  }
  func.func @transform_0(%arg0: i32, %arg1: i32) -> (i32, i32) {
    %c0_i32 = arith.constant 0 : i32
    %c0_i32_0 = arith.constant 0 : i32
    return %arg0, %c0_i32 : i32, i32
  }
  func.func @transform_1(%arg0: i32, %arg1: i32) -> (i32, i32) {
    %c0_i32 = arith.constant 0 : i32
    %c0_i32_0 = arith.constant 0 : i32
    return %c0_i32, %arg1 : i32, i32
  }
  func.func @transform_2(%arg0: i32, %arg1: i32) -> (i32, i32) {
    %c0_i32 = arith.constant 0 : i32
    return %arg0, %arg1 : i32, i32
  }
  func.func @transform_3(%arg0: i32, %arg1: i32) -> (i32, i32) {
    %c0_i32 = arith.constant 0 : i32
    return %arg0, %arg1 : i32, i32
  }
  func.func @transform_4(%arg0: i32, %arg1: i32) -> (i32, i32) {
    %c0_i32 = arith.constant 0 : i32
    return %arg0, %arg1 : i32, i32
  }
}

module attributes {stable_mosaic.version = 11 : i64} {
  func.func @_bn_relu_kernel(%arg0: i32, %arg1: memref<256x128xbf16, #tpu.memory_space<vmem>>, %arg2: memref<1x128xf32, #tpu.memory_space<vmem>>, %arg3: memref<1x128xf32, #tpu.memory_space<vmem>>, %arg4: memref<256x128xbf16, #tpu.memory_space<vmem>>) attributes {dimension_semantics = [#tpu.dimension_semantics<parallel>], iteration_bounds = array<i64: 2>, scalar_prefetch = 0 : i64, scratch_operands = 0 : i64, tpu.core_type = #tpu.core_type<tc>, window_params = [{transform_indices = @transform_0, window_bounds = array<i64: 256, 128>}, {pipeline_mode = #tpu.pipeline_mode<synchronous>, transform_indices = @transform_1, window_bounds = array<i64: 1, 128>}, {pipeline_mode = #tpu.pipeline_mode<synchronous>, transform_indices = @transform_2, window_bounds = array<i64: 1, 128>}, {transform_indices = @transform_3, window_bounds = array<i64: 256, 128>}]} {
    %c0 = arith.constant 0 : index
    %c0_0 = arith.constant 0 : index
    %0 = vector.load %arg1[%c0, %c0_0] : memref<256x128xbf16, #tpu.memory_space<vmem>>, vector<256x128xbf16>
    %1 = arith.extf %0 : vector<256x128xbf16> to vector<256x128xf32>
    %c0_1 = arith.constant 0 : index
    %c0_2 = arith.constant 0 : index
    %2 = vector.load %arg2[%c0_1, %c0_2] : memref<1x128xf32, #tpu.memory_space<vmem>>, vector<1x128xf32>
    %3 = vector.broadcast %2 : vector<1x128xf32> to vector<256x128xf32>
    %4 = arith.mulf %1, %3 : vector<256x128xf32>
    %c0_3 = arith.constant 0 : index
    %c0_4 = arith.constant 0 : index
    %5 = vector.load %arg3[%c0_3, %c0_4] : memref<1x128xf32, #tpu.memory_space<vmem>>, vector<1x128xf32>
    %6 = vector.broadcast %5 : vector<1x128xf32> to vector<256x128xf32>
    %7 = arith.addf %4, %6 : vector<256x128xf32>
    %cst = arith.constant 0.000000e+00 : f32
    %8 = vector.broadcast %cst : f32 to vector<256x128xf32>
    %9 = arith.maximumf %7, %8 : vector<256x128xf32>
    %10 = arith.truncf %9 : vector<256x128xf32> to vector<256x128xbf16>
    %c0_5 = arith.constant 0 : index
    %c0_6 = arith.constant 0 : index
    %11 = vector.load %arg4[%c0_5, %c0_6] : memref<256x128xbf16, #tpu.memory_space<vmem>>, vector<256x128xbf16>
    tpu.vector_store %arg4[%c0_5, %c0_6], %10 {strides = array<i32>} : memref<256x128xbf16, #tpu.memory_space<vmem>>, vector<256x128xbf16>,
    return
  }
  func.func @transform_0(%arg0: i32) -> (i32, i32) {
    %c0_i32 = arith.constant 0 : i32
    %c0_i32_0 = arith.constant 0 : i32
    return %arg0, %c0_i32 : i32, i32
  }
  func.func @transform_1(%arg0: i32) -> (i32, i32) {
    %c0_i32 = arith.constant 0 : i32
    %c0_i32_0 = arith.constant 0 : i32
    %c0_i32_1 = arith.constant 0 : i32
    return %c0_i32, %c0_i32_0 : i32, i32
  }
  func.func @transform_2(%arg0: i32) -> (i32, i32) {
    %c0_i32 = arith.constant 0 : i32
    %c0_i32_0 = arith.constant 0 : i32
    %c0_i32_1 = arith.constant 0 : i32
    return %c0_i32, %c0_i32_0 : i32, i32
  }
  func.func @transform_3(%arg0: i32) -> (i32, i32) {
    %c0_i32 = arith.constant 0 : i32
    %c0_i32_0 = arith.constant 0 : i32
    return %arg0, %c0_i32 : i32, i32
  }
}

module attributes {stable_mosaic.version = 11 : i64} {
  func.func @_conv_bn_stats_kernel(%arg0: i32, %arg1: i32, %arg2: memref<256x288xbf16, #tpu.memory_space<vmem>>, %arg3: memref<288x128xbf16, #tpu.memory_space<vmem>>, %arg4: memref<256x128xbf16, #tpu.memory_space<vmem>>, %arg5: memref<8x128xf32, #tpu.memory_space<vmem>>, %arg6: memref<8x128xf32, #tpu.memory_space<vmem>>) attributes {dimension_semantics = [#tpu.dimension_semantics<parallel>, #tpu.dimension_semantics<parallel>], iteration_bounds = array<i64: 2, 1>, scalar_prefetch = 0 : i64, scratch_operands = 0 : i64, tpu.core_type = #tpu.core_type<tc>, window_params = [{transform_indices = @transform_0, window_bounds = array<i64: 256, 288>}, {transform_indices = @transform_1, window_bounds = array<i64: 288, 128>}, {transform_indices = @transform_2, window_bounds = array<i64: 256, 128>}, {transform_indices = @transform_3, window_bounds = array<i64: 8, 128>}, {transform_indices = @transform_4, window_bounds = array<i64: 8, 128>}]} {
    %c0 = arith.constant 0 : index
    %c0_0 = arith.constant 0 : index
    %0 = vector.load %arg2[%c0, %c0_0] : memref<256x288xbf16, #tpu.memory_space<vmem>>, vector<256x288xbf16>
    %c0_1 = arith.constant 0 : index
    %c0_2 = arith.constant 0 : index
    %1 = vector.load %arg3[%c0_1, %c0_2] : memref<288x128xbf16, #tpu.memory_space<vmem>>, vector<288x128xbf16>
    %cst = arith.constant dense<0.000000e+00> : vector<256x128xf32>
    %2 = tpu.matmul %0, %1, %cst {dimension_numbers = #tpu.dot_dimension_numbers<[1], [0], [0], [1], [0, 0, 1, 1], [], []>} : vector<256x288xbf16>, vector<288x128xbf16>, vector<256x128xf32> -> vector<256x128xf32>
    %3 = arith.truncf %2 : vector<256x128xf32> to vector<256x128xbf16>
    %c0_3 = arith.constant 0 : index
    %c0_4 = arith.constant 0 : index
    %4 = vector.load %arg4[%c0_3, %c0_4] : memref<256x128xbf16, #tpu.memory_space<vmem>>, vector<256x128xbf16>
    tpu.vector_store %arg4[%c0_3, %c0_4], %3 {strides = array<i32>} : memref<256x128xbf16, #tpu.memory_space<vmem>>, vector<256x128xbf16>,
    %cst_5 = arith.constant dense<0.000000e+00> : vector<128xf32>
    %5 = vector.multi_reduction <add>, %2, %cst_5 [0] : vector<256x128xf32> to vector<128xf32>
    %6 = vector.shape_cast %5 : vector<128xf32> to vector<1x128xf32>
    %7 = arith.mulf %2, %2 : vector<256x128xf32>
    %cst_6 = arith.constant dense<0.000000e+00> : vector<128xf32>
    %8 = vector.multi_reduction <add>, %7, %cst_6 [0] : vector<256x128xf32> to vector<128xf32>
    %9 = vector.shape_cast %8 : vector<128xf32> to vector<1x128xf32>
    %10 = vector.shape_cast %6 : vector<1x128xf32> to vector<1x128xf32>
    %11 = vector.broadcast %10 : vector<1x128xf32> to vector<8x128xf32>
    %c0_7 = arith.constant 0 : index
    %c0_8 = arith.constant 0 : index
    %12 = vector.load %arg5[%c0_7, %c0_8] : memref<8x128xf32, #tpu.memory_space<vmem>>, vector<8x128xf32>
    tpu.vector_store %arg5[%c0_7, %c0_8], %11 {strides = array<i32>} : memref<8x128xf32, #tpu.memory_space<vmem>>, vector<8x128xf32>,
    %13 = vector.shape_cast %9 : vector<1x128xf32> to vector<1x128xf32>
    %14 = vector.broadcast %13 : vector<1x128xf32> to vector<8x128xf32>
    %c0_9 = arith.constant 0 : index
    %c0_10 = arith.constant 0 : index
    %15 = vector.load %arg6[%c0_9, %c0_10] : memref<8x128xf32, #tpu.memory_space<vmem>>, vector<8x128xf32>
    tpu.vector_store %arg6[%c0_9, %c0_10], %14 {strides = array<i32>} : memref<8x128xf32, #tpu.memory_space<vmem>>, vector<8x128xf32>,
    return
  }
  func.func @transform_0(%arg0: i32, %arg1: i32) -> (i32, i32) {
    %c0_i32 = arith.constant 0 : i32
    %c0_i32_0 = arith.constant 0 : i32
    return %arg0, %c0_i32 : i32, i32
  }
  func.func @transform_1(%arg0: i32, %arg1: i32) -> (i32, i32) {
    %c0_i32 = arith.constant 0 : i32
    %c0_i32_0 = arith.constant 0 : i32
    return %c0_i32, %arg1 : i32, i32
  }
  func.func @transform_2(%arg0: i32, %arg1: i32) -> (i32, i32) {
    %c0_i32 = arith.constant 0 : i32
    return %arg0, %arg1 : i32, i32
  }
  func.func @transform_3(%arg0: i32, %arg1: i32) -> (i32, i32) {
    %c0_i32 = arith.constant 0 : i32
    return %arg0, %arg1 : i32, i32
  }
  func.func @transform_4(%arg0: i32, %arg1: i32) -> (i32, i32) {
    %c0_i32 = arith.constant 0 : i32
    return %arg0, %arg1 : i32, i32
  }
}

module attributes {stable_mosaic.version = 11 : i64} {
  func.func @_bn_relu_kernel(%arg0: i32, %arg1: memref<256x128xbf16, #tpu.memory_space<vmem>>, %arg2: memref<1x128xf32, #tpu.memory_space<vmem>>, %arg3: memref<1x128xf32, #tpu.memory_space<vmem>>, %arg4: memref<256x128xf32, #tpu.memory_space<vmem>>) attributes {dimension_semantics = [#tpu.dimension_semantics<parallel>], iteration_bounds = array<i64: 2>, scalar_prefetch = 0 : i64, scratch_operands = 0 : i64, tpu.core_type = #tpu.core_type<tc>, window_params = [{transform_indices = @transform_0, window_bounds = array<i64: 256, 128>}, {pipeline_mode = #tpu.pipeline_mode<synchronous>, transform_indices = @transform_1, window_bounds = array<i64: 1, 128>}, {pipeline_mode = #tpu.pipeline_mode<synchronous>, transform_indices = @transform_2, window_bounds = array<i64: 1, 128>}, {transform_indices = @transform_3, window_bounds = array<i64: 256, 128>}]} {
    %c0 = arith.constant 0 : index
    %c0_0 = arith.constant 0 : index
    %0 = vector.load %arg1[%c0, %c0_0] : memref<256x128xbf16, #tpu.memory_space<vmem>>, vector<256x128xbf16>
    %1 = arith.extf %0 : vector<256x128xbf16> to vector<256x128xf32>
    %c0_1 = arith.constant 0 : index
    %c0_2 = arith.constant 0 : index
    %2 = vector.load %arg2[%c0_1, %c0_2] : memref<1x128xf32, #tpu.memory_space<vmem>>, vector<1x128xf32>
    %3 = vector.broadcast %2 : vector<1x128xf32> to vector<256x128xf32>
    %4 = arith.mulf %1, %3 : vector<256x128xf32>
    %c0_3 = arith.constant 0 : index
    %c0_4 = arith.constant 0 : index
    %5 = vector.load %arg3[%c0_3, %c0_4] : memref<1x128xf32, #tpu.memory_space<vmem>>, vector<1x128xf32>
    %6 = vector.broadcast %5 : vector<1x128xf32> to vector<256x128xf32>
    %7 = arith.addf %4, %6 : vector<256x128xf32>
    %cst = arith.constant 0.000000e+00 : f32
    %8 = vector.broadcast %cst : f32 to vector<256x128xf32>
    %9 = arith.maximumf %7, %8 : vector<256x128xf32>
    %c0_5 = arith.constant 0 : index
    %c0_6 = arith.constant 0 : index
    %10 = vector.load %arg4[%c0_5, %c0_6] : memref<256x128xf32, #tpu.memory_space<vmem>>, vector<256x128xf32>
    tpu.vector_store %arg4[%c0_5, %c0_6], %9 {strides = array<i32>} : memref<256x128xf32, #tpu.memory_space<vmem>>, vector<256x128xf32>,
    return
  }
  func.func @transform_0(%arg0: i32) -> (i32, i32) {
    %c0_i32 = arith.constant 0 : i32
    %c0_i32_0 = arith.constant 0 : i32
    return %arg0, %c0_i32 : i32, i32
  }
  func.func @transform_1(%arg0: i32) -> (i32, i32) {
    %c0_i32 = arith.constant 0 : i32
    %c0_i32_0 = arith.constant 0 : i32
    %c0_i32_1 = arith.constant 0 : i32
    return %c0_i32, %c0_i32_0 : i32, i32
  }
  func.func @transform_2(%arg0: i32) -> (i32, i32) {
    %c0_i32 = arith.constant 0 : i32
    %c0_i32_0 = arith.constant 0 : i32
    %c0_i32_1 = arith.constant 0 : i32
    return %c0_i32, %c0_i32_0 : i32, i32
  }
  func.func @transform_3(%arg0: i32) -> (i32, i32) {
    %c0_i32 = arith.constant 0 : i32
    %c0_i32_0 = arith.constant 0 : i32
    return %arg0, %c0_i32 : i32, i32
  }
}

</mosaic_0001>

<bundles_post_ra>
// kernel: conv_block_fwd.5
= control target key start
LH: loop header
LB: loop body
LE: loop exit
PB: predicated region body
PF: predicated region fallthrough
CT: control target
= control target key end

     0   :  { %s851_s12 = smov 0   ;;  %s993_s0 = inlined_call_operand.vmem [shape: bf16[512,128], index: 0, kind: input, shape index: {}, may-alias: {0,3}]   ;;  %s994_s1 = inlined_call_operand.vmem [shape: f32[1,128], index: 1, kind: input, shape index: {}]   ;;  %s995_s2 = inlined_call_operand.vmem [shape: f32[1,128], index: 2, kind: input, shape index: {}]   ;;  %s996_s3 = inlined_call_operand.vmem [shape: bf16[512,128], index: 3, kind: output, shape index: {}, may-alias: {0,3}]  }
   0x1 LB: > { %s564_s13 = sadd.s32 4294967295, %s829_s12   ;;  %p568_p0 = scmp.ge.s32.totalorder %s829_s12, 1  ;;  %s829_s12 = sphi %s851_s12, %s13_s12  }
   0x2   : > { %p138_p1 = scmp.lt.s32.totalorder %s829_s12, 3 }
   0x4   : > { %p139_p2 = pnand %p568_p0, %p138_p1 }
   0x5   : > { %s569_s14 = sshll.u32 (!%p139_p2), %s564_s13, 5 }
   0x6   : > { %142 = sbr.rel (%p139_p2) target bundleno = 55 (0x37), region = 32  ;;  %p163_p3 = scmp.lt.s32.totalorder (!%p139_p2), %s569_s14, 63 }
   0xb   : > { %s998_s14 = smov (!%p163_p3, %s569_s14), 63  ;;  %v573_v40 = vld [vmem:[%s994_s1] ss:$0 sm:$0xff] }
   0xc   : > { %s570_s15 = sshll.u32 %s998_s14, 2 }
   0xd   : > { %s867_s18 = scalar_lea.vmem %s993_s0, %s570_s15  ;;  %s934_s25 = scalar_lea.vmem %s996_s3, %s570_s15 }
   0xe   : > { %v642_v0 = vld [vmem:[%s867_s18] sm:$0xff]   ;;  %v785_v1 = vld [vmem:[%s867_s18 + $0x8] sm:$0xff]   ;;  %v786_v2 = vld [vmem:[%s867_s18 + $0x10] sm:$0xff]  }
   0xf   : > { %v643_v3 = vunpack.c.l.bf16 %v642_v0  ;;  %v644_v4 = vunpack.c.h.bf16 %v642_v0  ;;  %v647_v5 = vunpack.c.l.bf16 %v785_v1  ;;  %v648_v6 = vunpack.c.h.bf16 %v785_v1  ;;  %v787_v7 = vld [vmem:[%s867_s18 + $0x18] sm:$0xff]   ;;  %v788_v8 = vld [vmem:[%s867_s18 + $0x20] sm:$0xff]   ;;  %v789_v9 = vld [vmem:[%s867_s18 + $0x28] sm:$0xff]  }
  0x10   : > { %v651_v10 = vunpack.c.l.bf16 %v786_v2  ;;  %v652_v11 = vunpack.c.h.bf16 %v786_v2  ;;  %v655_v12 = vunpack.c.l.bf16 %v787_v7  ;;  %v656_v13 = vunpack.c.h.bf16 %v787_v7  ;;  %v790_v14 = vld [vmem:[%s867_s18 + $0x30] sm:$0xff]   ;;  %v791_v15 = vld [vmem:[%s867_s18 + $0x38] sm:$0xff]   ;;  %v792_v16 = vld [vmem:[%s867_s18 + $0x40] sm:$0xff]  }
  0x11   : > { %v659_v17 = vunpack.c.l.bf16 %v788_v8  ;;  %v660_v18 = vunpack.c.h.bf16 %v788_v8  ;;  %v663_v19 = vunpack.c.l.bf16 %v789_v9  ;;  %v664_v20 = vunpack.c.h.bf16 %v789_v9  ;;  %v793_v21 = vld [vmem:[%s867_s18 + $0x48] sm:$0xff]   ;;  %v794_v22 = vld [vmem:[%s867_s18 + $0x50] sm:$0xff]   ;;  %v795_v23 = vld [vmem:[%s867_s18 + $0x58] sm:$0xff]  }
  0x12   : > { %v667_v24 = vunpack.c.l.bf16 %v790_v14  ;;  %v668_v25 = vunpack.c.h.bf16 %v790_v14  ;;  %v671_v26 = vunpack.c.l.bf16 %v791_v15  ;;  %v672_v27 = vunpack.c.h.bf16 %v791_v15  ;;  %v796_v28 = vld [vmem:[%s867_s18 + $0x60] sm:$0xff]   ;;  %v797_v29 = vld [vmem:[%s867_s18 + $0x68] sm:$0xff]   ;;  %v798_v34 = vld [vmem:[%s867_s18 + $0x70] sm:$0xff]  }
  0x13   : > { %v675_v30 = vunpack.c.l.bf16 %v792_v16  ;;  %v676_v31 = vunpack.c.h.bf16 %v792_v16  ;;  %v679_v32 = vunpack.c.l.bf16 %v793_v21  ;;  %v680_v33 = vunpack.c.h.bf16 %v793_v21  ;;  %v799_v35 = vld [vmem:[%s867_s18 + $0x78] sm:$0xff]   ;;  %v903_v9 = vld [vmem:[%s995_s2] ss:$0 sm:$0xff] }
  0x14   : > { %v683_v36 = vunpack.c.l.bf16 %v794_v22  ;;  %v684_v37 = vunpack.c.h.bf16 %v794_v22  ;;  %v687_v38 = vunpack.c.l.bf16 %v795_v23  ;;  %v688_v39 = vunpack.c.h.bf16 %v795_v23 }
  0x15   : > { %v691_v41 = vunpack.c.l.bf16 %v796_v28  ;;  %v692_v42 = vunpack.c.h.bf16 %v796_v28  ;;  %v695_v43 = vunpack.c.l.bf16 %v797_v29  ;;  %v696_v44 = vunpack.c.h.bf16 %v797_v29 }
  0x16   : > { %v699_v45 = vunpack.c.l.bf16 %v798_v34  ;;  %v700_v46 = vunpack.c.h.bf16 %v798_v34  ;;  %v703_v47 = vunpack.c.l.bf16 %v799_v35  ;;  %v704_v48 = vunpack.c.h.bf16 %v799_v35 }
  0x17   : > { %v245_v49 = vmul.f32 %v643_v3, %v573_v40  ;;  %v246_v50 = vmul.f32 %v644_v4, %v573_v40  ;;  %v247_v51 = vmul.f32 %v647_v5, %v573_v40  ;;  %v248_v52 = vmul.f32 %v648_v6, %v573_v40 }
  0x18   : > { %v249_v53 = vmul.f32 %v651_v10, %v573_v40  ;;  %v250_v54 = vmul.f32 %v652_v11, %v573_v40  ;;  %v251_v55 = vmul.f32 %v655_v12, %v573_v40  ;;  %v252_v56 = vmul.f32 %v656_v13, %v573_v40 }
  0x19   : > { %v253_v57 = vmul.f32 %v659_v17, %v573_v40  ;;  %v254_v58 = vmul.f32 %v660_v18, %v573_v40  ;;  %v255_v59 = vmul.f32 %v663_v19, %v573_v40  ;;  %v256_v60 = vmul.f32 %v664_v20, %v573_v40 }
  0x1a   : > { %v257_v61 = vmul.f32 %v667_v24, %v573_v40  ;;  %v258_v62 = vmul.f32 %v668_v25, %v573_v40  ;;  %v259_v63 = vmul.f32 %v671_v26, %v573_v40  ;;  %v260_v0 = vmul.f32 %v672_v27, %v573_v40 }
  0x1b   : > { %v261_v1 = vmul.f32 %v675_v30, %v573_v40  ;;  %v262_v2 = vmul.f32 %v676_v31, %v573_v40  ;;  %v888_v7 = vmul.f32 %v679_v32, %v573_v40  ;;  %v890_v3 = vmul.f32 %v680_v33, %v573_v40 }
  0x1c   : > { %v892_v4 = vmul.f32 %v683_v36, %v573_v40  ;;  %v894_v5 = vmul.f32 %v684_v37, %v573_v40  ;;  %v896_v6 = vmul.f32 %v687_v38, %v573_v40  ;;  %v898_v8 = vmul.f32 %v688_v39, %v573_v40 }
  0x1d   : > { %v905_v10 = vmul.f32 %v691_v41, %v573_v40  ;;  %v907_v11 = vmul.f32 %v692_v42, %v573_v40  ;;  %v909_v12 = vmul.f32 %v695_v43, %v573_v40  ;;  %v911_v13 = vmul.f32 %v696_v44, %v573_v40 }
  0x1e   : > { %v913_v14 = vmul.f32 %v699_v45, %v573_v40  ;;  %v915_v15 = vmul.f32 %v700_v46, %v573_v40  ;;  %v917_v16 = vmul.f32 %v703_v47, %v573_v40  ;;  %v919_v17 = vmul.f32 %v704_v48, %v573_v40 }
  0x1f   : > { %v284_v18 = vadd.f32 %v903_v9, %v245_v49  ;;  %v285_v19 = vadd.f32 %v903_v9, %v246_v50  ;;  %v286_v20 = vadd.f32 %v903_v9, %v247_v51  ;;  %v287_v21 = vadd.f32 %v903_v9, %v248_v52 }
  0x20   : > { %v288_v22 = vadd.f32 %v903_v9, %v249_v53  ;;  %v289_v23 = vadd.f32 %v903_v9, %v250_v54  ;;  %v290_v24 = vadd.f32 %v903_v9, %v251_v55  ;;  %v291_v25 = vadd.f32 %v903_v9, %v252_v56 }
  0x21   : > { %v316_v26 = vmax.f32 %v284_v18, 0.0  ;;  %v317_v27 = vmax.f32 %v285_v19, 0.0  ;;  %v318_v28 = vmax.f32 %v286_v20, 0.0  ;;  %v319_v29 = vmax.f32 %v287_v21, 0.0 }
  0x22   : > { %v320_v30 = vmax.f32 %v288_v22, 0.0  ;;  %v321_v31 = vmax.f32 %v289_v23, 0.0  ;;  %v322_v32 = vmax.f32 %v290_v24, 0.0  ;;  %v323_v33 = vmax.f32 %v291_v25, 0.0 }
  0x23   : > { %v708_v34 = vpack.c.bf16 %v317_v27, %v316_v26  ;;  %v713_v35 = vpack.c.bf16 %v319_v29, %v318_v28  ;;  %v292_v36 = vadd.f32 %v903_v9, %v253_v57  ;;  %v293_v37 = vadd.f32 %v903_v9, %v254_v58 }
  0x24   : > { %v718_v38 = vpack.c.bf16 %v321_v31, %v320_v30  ;;  %v723_v39 = vpack.c.bf16 %v323_v33, %v322_v32  ;;  %v294_v40 = vadd.f32 %v903_v9, %v255_v59  ;;  %v295_v41 = vadd.f32 %v903_v9, %v256_v60 }
  0x25   : > { %709 = vst [vmem:[%s934_s25] sm:$0xff] %v708_v34   ;;  %800 = vst [vmem:[%s934_s25 + $0x8] sm:$0xff] %v713_v35   ;;  %v324_v42 = vmax.f32 %v292_v36, 0.0  ;;  %v325_v43 = vmax.f32 %v293_v37, 0.0  ;;  %v296_v44 = vadd.f32 %v903_v9, %v257_v61  ;;  %v297_v45 = vadd.f32 %v903_v9, %v258_v62 }
  0x26   : > { %801 = vst [vmem:[%s934_s25 + $0x10] sm:$0xff] %v718_v38   ;;  %802 = vst [vmem:[%s934_s25 + $0x18] sm:$0xff] %v723_v39   ;;  %v326_v46 = vmax.f32 %v294_v40, 0.0  ;;  %v327_v47 = vmax.f32 %v295_v41, 0.0  ;;  %v298_v48 = vadd.f32 %v903_v9, %v259_v63  ;;  %v299_v49 = vadd.f32 %v903_v9, %v260_v0 }
  0x27   : > { %v728_v50 = vpack.c.bf16 %v325_v43, %v324_v42  ;;  %v328_v51 = vmax.f32 %v296_v44, 0.0  ;;  %v329_v52 = vmax.f32 %v297_v45, 0.0  ;;  %v300_v53 = vadd.f32 %v903_v9, %v261_v1 }
  0x28   : > { %v733_v54 = vpack.c.bf16 %v327_v47, %v326_v46  ;;  %v330_v55 = vmax.f32 %v298_v48, 0.0  ;;  %v331_v56 = vmax.f32 %v299_v49, 0.0  ;;  %v301_v57 = vadd.f32 %v903_v9, %v262_v2 }
  0x29   : > { %803 = vst [vmem:[%s934_s25 + $0x20] sm:$0xff] %v728_v50   ;;  %v738_v58 = vpack.c.bf16 %v329_v52, %v328_v51  ;;  %v332_v59 = vmax.f32 %v300_v53, 0.0  ;;  %v302_v60 = vadd.f32 %v903_v9, %v888_v7  ;;  %v303_v61 = vadd.f32 %v903_v9, %v890_v3 }
  0x2a   : > { %804 = vst [vmem:[%s934_s25 + $0x28] sm:$0xff] %v733_v54   ;;  %v743_v62 = vpack.c.bf16 %v331_v56, %v330_v55  ;;  %v333_v63 = vmax.f32 %v301_v57, 0.0  ;;  %v304_v0 = vadd.f32 %v903_v9, %v892_v4  ;;  %v305_v1 = vadd.f32 %v903_v9, %v894_v5 }
  0x2b   : > { %805 = vst [vmem:[%s934_s25 + $0x30] sm:$0xff] %v738_v58   ;;  %v334_v2 = vmax.f32 %v302_v60, 0.0  ;;  %v335_v18 = vmax.f32 %v303_v61, 0.0  ;;  %v306_v19 = vadd.f32 %v903_v9, %v896_v6  ;;  %v307_v7 = vadd.f32 %v903_v9, %v898_v8 }
  0x2c   : > { %806 = vst [vmem:[%s934_s25 + $0x38] sm:$0xff] %v743_v62   ;;  %v748_v3 = vpack.c.bf16 %v333_v63, %v332_v59  ;;  %v336_v20 = vmax.f32 %v304_v0, 0.0  ;;  %v337_v21 = vmax.f32 %v305_v1, 0.0  ;;  %v308_v4 = vadd.f32 %v903_v9, %v905_v10 }
  0x2d   : > { %v753_v22 = vpack.c.bf16 %v335_v18, %v334_v2  ;;  %v338_v5 = vmax.f32 %v306_v19, 0.0  ;;  %v339_v23 = vmax.f32 %v307_v7, 0.0  ;;  %v309_v24 = vadd.f32 %v903_v9, %v907_v11 }
  0x2e   : > { %807 = vst [vmem:[%s934_s25 + $0x40] sm:$0xff] %v748_v3   ;;  %v758_v6 = vpack.c.bf16 %v337_v21, %v336_v20  ;;  %v340_v25 = vmax.f32 %v308_v4, 0.0  ;;  %v310_v8 = vadd.f32 %v903_v9, %v909_v12  ;;  %v311_v26 = vadd.f32 %v903_v9, %v911_v13 }
  0x2f   : > { %808 = vst [vmem:[%s934_s25 + $0x48] sm:$0xff] %v753_v22   ;;  %v763_v27 = vpack.c.bf16 %v339_v23, %v338_v5  ;;  %v341_v10 = vmax.f32 %v309_v24, 0.0  ;;  %v312_v28 = vadd.f32 %v903_v9, %v913_v14  ;;  %v313_v11 = vadd.f32 %v903_v9, %v915_v15 }
  0x30   : > { %809 = vst [vmem:[%s934_s25 + $0x50] sm:$0xff] %v758_v6   ;;  %v342_v29 = vmax.f32 %v310_v8, 0.0  ;;  %v343_v30 = vmax.f32 %v311_v26, 0.0  ;;  %v314_v12 = vadd.f32 %v903_v9, %v917_v16  ;;  %v315_v13 = vadd.f32 %v903_v9, %v919_v17 }
  0x31   : > { %810 = vst [vmem:[%s934_s25 + $0x58] sm:$0xff] %v763_v27   ;;  %v768_v31 = vpack.c.bf16 %v341_v10, %v340_v25  ;;  %v344_v32 = vmax.f32 %v312_v28, 0.0  ;;  %v345_v33 = vmax.f32 %v313_v11, 0.0 }
  0x32   : > { %v773_v14 = vpack.c.bf16 %v343_v30, %v342_v29  ;;  %v346_v34 = vmax.f32 %v314_v12, 0.0  ;;  %v347_v35 = vmax.f32 %v315_v13, 0.0 }
  0x33   : > { %811 = vst [vmem:[%s934_s25 + $0x60] sm:$0xff] %v768_v31   ;;  %v778_v15 = vpack.c.bf16 %v345_v33, %v344_v32 }
  0x34   : > { %812 = vst [vmem:[%s934_s25 + $0x68] sm:$0xff] %v773_v14   ;;  %v783_v36 = vpack.c.bf16 %v347_v35, %v346_v34 }
  0x35   : > { %813 = vst [vmem:[%s934_s25 + $0x70] sm:$0xff] %v778_v15  }
  0x36   : > { %814 = vst [vmem:[%s934_s25 + $0x78] sm:$0xff] %v783_v36  }
  0x37 PF: > { %s13_s12 = sadd.s32 1, %s829_s12  }
  0x38   : > { %p10_p4 = scmp.ge.s32.totalorder %s13_s12, 4  }
  0x3a   :  { %12 = sbr.rel (!%p10_p4) target bundleno = 1 (0x1), region = 62 }

// kernel: conv_block_fwd.4
= control target key start
LH: loop header
LB: loop body
LE: loop exit
PB: predicated region body
PF: predicated region fallthrough
CT: control target
= control target key end

     0   :  { %s1425_s15 = smov 0   ;;  %s1427_s16 = smov 0   ;;  %s1609_s0 = inlined_call_operand.vmem [shape: bf16[512,48], index: 0, kind: input, shape index: {}]   ;;  %s1610_s1 = inlined_call_operand.vmem [shape: bf16[48,128], index: 1, kind: input, shape index: {}]   ;;  %s1611_s2 = inlined_call_operand.vmem [shape: bf16[512,128], index: 2, kind: output, shape index: {0}]   ;;  %s1612_s3 = inlined_call_operand.vmem [shape: f32[16,128], index: 3, kind: output, shape index: {1}]   ;;  %s1613_s4 = inlined_call_operand.vmem [shape: f32[16,128], index: 4, kind: output, shape index: {2}]  }
   0x1   :  { %s1429_s17 = smov 0  }
   0x2 LB: > { %s27_s18 = sadd.s32 1, %s1394_s16  ;;  %p1067_p0 = scmp.ge.s32.totalorder %s1398_s17, 1  ;;  %s1398_s17 = sphi %s1429_s17, %s15_s17   ;;  %s1394_s16 = sphi %s1427_s16, %s1615_s16   ;;  %s1390_s15 = sphi %s1425_s15, %s1614_s15  }
   0x3   : > { %p29_p1 = scmp.ge.s32.totalorder %s27_s18, 2  ;;  %p195_p2 = scmp.lt.s32.totalorder %s1398_s17, 3 }
   0x5   : > { %s1617_s18 = smov (%p29_p1, %s27_s18), 0  ;;  %p196_p3 = pnand %p1067_p0, %p195_p2 }
   0x6   : > { %s1068_s21 = sshll.u32 (!%p196_p3), %s1390_s15, 5  ;;  %p261_p5 = scmp.lt.s32.totalorder (!%p196_p3), %s1390_s15, 1 }
   0x7   : > { %199 = sbr.rel (%p196_p3) target bundleno = 301 (0x12d), region = 28  ;;  %p243_p4 = scmp.lt.s32.totalorder (!%p196_p3), %s1068_s21, 63 }
   0xc   : > { %v1357_v0 = vld [vmem:[%s1610_s1 + $0x10] sm:$0xff]   ;;  %v1358_v1 = vld [vmem:[%s1610_s1 + $0x8] sm:$0xff]   ;;  %s1619_s21 = smov (!%p243_p4, %s1068_s21), 63  ;;  %v1359_v2 = vld [vmem:[%s1610_s1] sm:$0xff]   ;;  %vm412_vm0 = vcmask 392192   ;;  %s1621_s15 = smov (!%p261_p5, %s1390_s15), 1 }
   0xd   : > { %1289 = vmatprep.subr.bf16.mxu0 %v1357_v0  ;;  %1327 = vmatprep.subr.bf16.mxu1 %v1357_v0  ;;  %s1069_s26 = sshll.u32 %s1619_s21, 2  ;;  %s1072_s7 = sshll.u32 %s1621_s15, 3 }
   0xe   : > { %1290 = vmatpush3.bf16.msra.mxu0 %v1357_v0  ;;  %1330 = vmatpush3.bf16.msra.mxu1 %v1357_v0  ;;  %s1463_s29 = scalar_lea.vmem %s1609_s0, %s1069_s26  ;;  %s1502_s6 = scalar_lea.vmem %s1611_s2, %s1069_s26 }
   0xf   : > { %1291 = vmatprep.subr.bf16.mxu0 %v1358_v1  ;;  %1328 = vmatprep.subr.bf16.mxu1 %v1358_v1  ;;  %v1360_v3 = vld [vmem:[%s1463_s29] sm:$0xff]   ;;  %v1361_v4 = vld [vmem:[%s1463_s29 + $0x8] sm:$0xff]   ;;  %v1362_v5 = vld [vmem:[%s1463_s29 + $0x10] sm:$0xff]   ;;  %s267_s10 = scalar_lea.vmem %s1612_s3, %s1072_s7  ;;  %s274_s13 = scalar_lea.vmem %s1613_s4, %s1072_s7 }
  0x10   : > { %1295 = vmatprep.mubr.msk.bf16.mxu0 %vm412_vm0, %v1360_v3  ;;  %v1368_v6 = vld [vmem:[%s1463_s29 + $0x40] sm:$0xff]   ;;  %v1369_v7 = vld [vmem:[%s1463_s29 + $0x48] sm:$0xff]   ;;  %v1370_v8 = vld [vmem:[%s1463_s29 + $0x50] sm:$0xff]  }
  0x11   : > { %1311 = vmatprep.mubr.msk.bf16.mxu1 %vm412_vm0, %v1368_v6  ;;  %v1363_v9 = vld [vmem:[%s1463_s29 + $0x18] sm:$0xff]   ;;  %v1364_v10 = vld [vmem:[%s1463_s29 + $0x20] sm:$0xff]   ;;  %v1365_v13 = vld [vmem:[%s1463_s29 + $0x28] sm:$0xff]  }
  0x12   : > { %1292 = vmatpush3.bf16.msra.mxu0 %v1358_v1  ;;  %1331 = vmatpush3.bf16.msra.mxu1 %v1358_v1  ;;  %v1371_v11 = vld [vmem:[%s1463_s29 + $0x58] sm:$0xff]   ;;  %v1372_v12 = vld [vmem:[%s1463_s29 + $0x60] sm:$0xff]   ;;  %v1366_v14 = vld [vmem:[%s1463_s29 + $0x30] sm:$0xff]  }
  0x13   : > { %1293 = vmatprep.subr.bf16.mxu0 %v1359_v2  ;;  %1329 = vmatprep.subr.bf16.mxu1 %v1359_v2  ;;  %v1373_v15 = vld [vmem:[%s1463_s29 + $0x68] sm:$0xff]   ;;  %v1374_v16 = vld [vmem:[%s1463_s29 + $0x70] sm:$0xff]   ;;  %v1367_v17 = vld [vmem:[%s1463_s29 + $0x38] sm:$0xff]  }
  0x14   : > { %v1375_v18 = vld [vmem:[%s1463_s29 + $0x78] sm:$0xff]  }
  0x16   : > { %1294 = vmatpush3.bf16.msra.mxu0 %v1359_v2  ;;  %1332 = vmatpush3.bf16.msra.mxu1 %v1359_v2 }
  0x19   : > { %1296 = vmatmul.mubr.msk.bf16.vlgmr.msra.gmra.mxu0 %vm412_vm0, %v1361_v4  ;;  %1312 = vmatmul.mubr.msk.bf16.vlgmr.msra.gmra.mxu1 %vm412_vm0, %v1369_v7 }
  0x1a   : > { %1299 = vmatprep.mubr.msk.bf16.mxu0 %vm412_vm0, %v1362_v5  ;;  %1315 = vmatprep.mubr.msk.bf16.mxu1 %vm412_vm0, %v1370_v8 }
  0x21   : > { %1300 = vmatmul.mubr.msk.bf16.gmra.mxu0 %vm412_vm0, %v1363_v9  ;;  %1316 = vmatmul.mubr.msk.bf16.gmra.mxu1 %vm412_vm0, %v1371_v11 }
  0x22   : > { %1303 = vmatprep.mubr.msk.bf16.mxu0 %vm412_vm0, %v1364_v10  ;;  %1319 = vmatprep.mubr.msk.bf16.mxu1 %vm412_vm0, %v1372_v12 }
  0x29   : > { %1304 = vmatmul.mubr.msk.bf16.gmra.mxu0 %vm412_vm0, %v1365_v13  ;;  %1320 = vmatmul.mubr.msk.bf16.gmra.mxu1 %vm412_vm0, %v1373_v15 }
  0x2a   : > { %1307 = vmatprep.mubr.msk.bf16.mxu0 %vm412_vm0, %v1366_v14  ;;  %1323 = vmatprep.mubr.msk.bf16.mxu1 %vm412_vm0, %v1374_v16 }
  0x31   : > { %1308 = vmatmul.mubr.msk.bf16.gmra.mxu0 %vm412_vm0, %v1367_v17  ;;  %1324 = vmatmul.mubr.msk.bf16.gmra.mxu1 %vm412_vm0, %v1375_v18 }
  0xd9   : > { %v1297_v19 = vpop.f32.mrf.mxu0  ;;  %v1504_v22 = vpop.f32.mrf.mxu1 }
  0xda   : > { %v821_v32 = vmul.f32 %v1297_v19, %v1297_v19 }
  0xdb   : > { %v495_v20 = vpop.f32.mrf.mxu0  ;;  %v1506_v25 = vpop.f32.mrf.mxu1 }
  0xdc   : > { %v819_v26 = vmul.f32 %v495_v20, %v495_v20 }
  0xdd   : > { %v1298_v21 = vpop.f32.mrf.mxu0  ;;  %v1509_v31 = vpop.f32.mrf.mxu1 }
  0xde   : > { %v1183_v23 = vpack.c.bf16 %v1298_v21, %v1297_v19  ;;  %v1223_v35 = vpack.c.bf16 %v1509_v31, %v1504_v22  ;;  %v822_v38 = vmul.f32 %v1298_v21, %v1298_v21 }
  0xdf   : > { %v498_v24 = vpop.f32.mrf.mxu0  ;;  %v1514_v37 = vpop.f32.mrf.mxu1 }
  0xe0   : > { %1255 = vst [vmem:[%s1502_s6 + $0x8] sm:$0xff] %v1183_v23   ;;  %v1178_v27 = vpack.c.bf16 %v498_v24, %v495_v20  ;;  %v782_v28 = vadd.f32 %v498_v24, %v495_v20  ;;  %v820_v29 = vmul.f32 %v498_v24, %v498_v24  ;;  %1263 = vst [vmem:[%s1502_s6 + $0x48] sm:$0xff] %v1223_v35  }
  0xe1   : > { %v1301_v30 = vpop.f32.mrf.mxu0  ;;  %v1218_v41 = vpack.c.bf16 %v1514_v37, %v1506_v25  ;;  %v1519_v43 = vpop.f32.mrf.mxu1 }
  0xe2   : > { %1179 = vst [vmem:[%s1502_s6] sm:$0xff] %v1178_v27   ;;  %v783_v33 = vadd.f32 %v1297_v19, %v782_v28  ;;  %v851_v34 = vadd.f32 %v820_v29, %v819_v26  ;;  %v825_v56 = vmul.f32 %v1301_v30, %v1301_v30 }
  0xe3   : > { %v511_v36 = vpop.f32.mrf.mxu0  ;;  %1262 = vst [vmem:[%s1502_s6 + $0x40] sm:$0xff] %v1218_v41   ;;  %v1522_v49 = vpop.f32.mrf.mxu1 }
  0xe4   : > { %v852_v39 = vadd.f32 %v851_v34, %v821_v32  ;;  %v784_v40 = vadd.f32 %v1298_v21, %v783_v33  ;;  %v823_v45 = vmul.f32 %v511_v36, %v511_v36 }
  0xe5   : > { %v1302_v42 = vpop.f32.mrf.mxu0  ;;  %v1525_v55 = vpop.f32.mrf.mxu1 }
  0xe6   : > { %v785_v44 = vadd.f32 %v784_v40, %v511_v36  ;;  %v853_v46 = vadd.f32 %v852_v39, %v822_v38  ;;  %v1193_v47 = vpack.c.bf16 %v1302_v42, %v1301_v30  ;;  %v1233_v59 = vpack.c.bf16 %v1525_v55, %v1519_v43 }
  0xe7   : > { %v514_v48 = vpop.f32.mrf.mxu0  ;;  %v1530_v61 = vpop.f32.mrf.mxu1  ;;  %v826_v62 = vmul.f32 %v1302_v42, %v1302_v42 }
  0xe8   : > { %v854_v50 = vadd.f32 %v853_v46, %v823_v45  ;;  %1257 = vst [vmem:[%s1502_s6 + $0x18] sm:$0xff] %v1193_v47   ;;  %v1188_v51 = vpack.c.bf16 %v514_v48, %v511_v36  ;;  %v786_v52 = vadd.f32 %v785_v44, %v514_v48  ;;  %v824_v53 = vmul.f32 %v514_v48, %v514_v48 }
  0xe9   : > { %v1305_v54 = vpop.f32.mrf.mxu0  ;;  %1265 = vst [vmem:[%s1502_s6 + $0x58] sm:$0xff] %v1233_v59   ;;  %v1228_v1 = vpack.c.bf16 %v1530_v61, %v1522_v49  ;;  %v1535_v3 = vpop.f32.mrf.mxu1  ;;  %v836_v59 = vmul.f32 %v1514_v37, %v1514_v37 }
  0xea   : > { %1256 = vst [vmem:[%s1502_s6 + $0x10] sm:$0xff] %v1188_v51   ;;  %v787_v57 = vadd.f32 %v1301_v30, %v786_v52  ;;  %v855_v58 = vadd.f32 %v854_v50, %v824_v53  ;;  %v829_v16 = vmul.f32 %v1305_v54, %v1305_v54 }
  0xeb   : > { %v527_v60 = vpop.f32.mrf.mxu0  ;;  %1264 = vst [vmem:[%s1502_s6 + $0x50] sm:$0xff] %v1228_v1   ;;  %v1538_v9 = vpop.f32.mrf.mxu1  ;;  %v838_v1 = vmul.f32 %v1509_v31, %v1509_v31 }
  0xec   : > { %v856_v63 = vadd.f32 %v855_v58, %v825_v56  ;;  %v788_v0 = vadd.f32 %v1302_v42, %v787_v57  ;;  %v827_v5 = vmul.f32 %v527_v60, %v527_v60 }
  0xed   : > { %v1306_v2 = vpop.f32.mrf.mxu0  ;;  %v1541_v15 = vpop.f32.mrf.mxu1 }
  0xee   : > { %v789_v4 = vadd.f32 %v788_v0, %v527_v60  ;;  %v857_v6 = vadd.f32 %v856_v63, %v826_v62  ;;  %v1203_v7 = vpack.c.bf16 %v1306_v2, %v1305_v54  ;;  %v1243_v19 = vpack.c.bf16 %v1541_v15, %v1535_v3 }
  0xef   : > { %v530_v8 = vpop.f32.mrf.mxu0  ;;  %v594_v21 = vpop.f32.mrf.mxu1  ;;  %v830_v23 = vmul.f32 %v1306_v2, %v1306_v2  ;;  %v837_v62 = vmul.f32 %v1504_v22, %v1504_v22 }
  0xf0   : > { %v858_v10 = vadd.f32 %v857_v6, %v827_v5  ;;  %1259 = vst [vmem:[%s1502_s6 + $0x28] sm:$0xff] %v1203_v7   ;;  %v1198_v11 = vpack.c.bf16 %v530_v8, %v527_v60  ;;  %v790_v12 = vadd.f32 %v789_v4, %v530_v8  ;;  %v828_v13 = vmul.f32 %v530_v8, %v530_v8 }
  0xf1   : > { %v1309_v14 = vpop.f32.mrf.mxu0  ;;  %1267 = vst [vmem:[%s1502_s6 + $0x68] sm:$0xff] %v1243_v19   ;;  %v1238_v27 = vpack.c.bf16 %v594_v21, %v1538_v9  ;;  %v1548_v29 = vpop.f32.mrf.mxu1  ;;  %v839_v5 = vmul.f32 %v1522_v49, %v1522_v49  ;;  %v840_v8 = vmul.f32 %v1530_v61, %v1530_v61  ;;  %v845_v19 = vmul.f32 %v1535_v3, %v1535_v3 }
  0xf2   : > { %1258 = vst [vmem:[%s1502_s6 + $0x20] sm:$0xff] %v1198_v11   ;;  %v791_v17 = vadd.f32 %v1305_v54, %v790_v12  ;;  %v859_v18 = vadd.f32 %v858_v10, %v828_v13  ;;  %v833_v44 = vmul.f32 %v1309_v14, %v1309_v14  ;;  %v835_v54 = vmul.f32 %v1506_v25, %v1506_v25 }
  0xf3   : > { %v543_v20 = vpop.f32.mrf.mxu0  ;;  %1266 = vst [vmem:[%s1502_s6 + $0x60] sm:$0xff] %v1238_v27   ;;  %v607_v36 = vpop.f32.mrf.mxu1 }
  0xf4   : > { %v860_v24 = vadd.f32 %v859_v18, %v829_v16  ;;  %v792_v26 = vadd.f32 %v1306_v2, %v791_v17  ;;  %v831_v32 = vmul.f32 %v543_v20, %v543_v20  ;;  %v844_v18 = vmul.f32 %v594_v21, %v594_v21 }
  0xf5   : > { %v1310_v28 = vpop.f32.mrf.mxu0  ;;  %v1326_v42 = vpop.f32.mrf.mxu1 }
  0xf6   : > { %v793_v30 = vadd.f32 %v792_v26, %v543_v20  ;;  %v861_v33 = vadd.f32 %v860_v24, %v830_v23  ;;  %v1213_v34 = vpack.c.bf16 %v1310_v28, %v1309_v14  ;;  %v1253_v47 = vpack.c.bf16 %v1326_v42, %v1548_v29 }
  0xf7   : > { %v546_v35 = vpop.f32.mrf.mxu0  ;;  %v610_v48 = vpop.f32.mrf.mxu1  ;;  %v834_v50 = vmul.f32 %v1310_v28, %v1310_v28  ;;  %v846_v23 = vmul.f32 %v1541_v15, %v1541_v15 }
  0xf8   : > { %v862_v38 = vadd.f32 %v861_v33, %v831_v32  ;;  %1261 = vst [vmem:[%s1502_s6 + $0x38] sm:$0xff] %v1213_v34   ;;  %v1208_v39 = vpack.c.bf16 %v546_v35, %v543_v20  ;;  %v794_v40 = vadd.f32 %v793_v30, %v546_v35  ;;  %v832_v41 = vmul.f32 %v546_v35, %v546_v35 }
  0xf9   : > { %1269 = vst [vmem:[%s1502_s6 + $0x78] sm:$0xff] %v1253_v47   ;;  %v1248_v53 = vpack.c.bf16 %v610_v48, %v607_v36  ;;  %v849_v32 = vmul.f32 %v1548_v29, %v1548_v29  ;;  %v850_v34 = vmul.f32 %v1326_v42, %v1326_v42 }
  0xfa   : > { %1260 = vst [vmem:[%s1502_s6 + $0x30] sm:$0xff] %v1208_v39   ;;  %v795_v45 = vadd.f32 %v1309_v14, %v794_v40  ;;  %v863_v46 = vadd.f32 %v862_v38, %v832_v41  ;;  %v843_v14 = vmul.f32 %v1538_v9, %v1538_v9 }
  0xfb   : > { %1268 = vst [vmem:[%s1502_s6 + $0x70] sm:$0xff] %v1248_v53  }
  0xfc   : > { %v796_v51 = vadd.f32 %v1310_v28, %v795_v45  ;;  %v864_v52 = vadd.f32 %v863_v46, %v833_v44 }
  0xfe   : > { %v865_v56 = vadd.f32 %v864_v52, %v834_v50  ;;  %v797_v57 = vadd.f32 %v796_v51, %v1506_v25 }
 0x100   : > { %v798_v58 = vadd.f32 %v797_v57, %v1514_v37  ;;  %v866_v60 = vadd.f32 %v865_v56, %v835_v54 }
 0x102   : > { %v799_v63 = vadd.f32 %v1504_v22, %v798_v58  ;;  %v867_v0 = vadd.f32 %v866_v60, %v836_v59  ;;  %v841_v22 = vmul.f32 %v1519_v43, %v1519_v43 }
 0x104   : > { %v868_v2 = vadd.f32 %v867_v0, %v837_v62  ;;  %v800_v4 = vadd.f32 %v1509_v31, %v799_v63  ;;  %v842_v31 = vmul.f32 %v1525_v55, %v1525_v55 }
 0x106   : > { %v801_v25 = vadd.f32 %v800_v4, %v1522_v49  ;;  %v869_v6 = vadd.f32 %v868_v2, %v838_v1 }
 0x108   : > { %v870_v37 = vadd.f32 %v869_v6, %v839_v5  ;;  %v802_v7 = vadd.f32 %v801_v25, %v1530_v61 }
 0x10a   : > { %v803_v10 = vadd.f32 %v1519_v43, %v802_v7  ;;  %v871_v11 = vadd.f32 %v870_v37, %v840_v8 }
 0x10c   : > { %v872_v12 = vadd.f32 %v871_v11, %v841_v22  ;;  %v804_v13 = vadd.f32 %v1525_v55, %v803_v10 }
 0x10e   : > { %v805_v49 = vadd.f32 %v804_v13, %v1538_v9  ;;  %v873_v16 = vadd.f32 %v872_v12, %v842_v31  ;;  %v847_v9 = vmul.f32 %v607_v36, %v607_v36 }
 0x110   : > { %v874_v17 = vadd.f32 %v873_v16, %v843_v14  ;;  %v806_v61 = vadd.f32 %v805_v49, %v594_v21  ;;  %v848_v21 = vmul.f32 %v610_v48, %v610_v48 }
 0x112   : > { %v807_v43 = vadd.f32 %v1535_v3, %v806_v61  ;;  %v875_v20 = vadd.f32 %v874_v17, %v844_v18 }
 0x114   : > { %v876_v55 = vadd.f32 %v875_v20, %v845_v19  ;;  %v808_v24 = vadd.f32 %v1541_v15, %v807_v43 }
 0x116   : > { %v809_v26 = vadd.f32 %v808_v24, %v607_v36  ;;  %v877_v27 = vadd.f32 %v876_v55, %v846_v23 }
 0x118   : > { %v878_v28 = vadd.f32 %v877_v27, %v847_v9  ;;  %v810_v30 = vadd.f32 %v809_v26, %v610_v48 }
 0x11a   : > { %v811_v33 = vadd.f32 %v1548_v29, %v810_v30  ;;  %v879_v3 = vadd.f32 %v878_v28, %v848_v21 }
 0x11c   : > { %v812_v35 = vadd.f32 %v1326_v42, %v811_v33  ;;  %v880_v38 = vadd.f32 %v879_v3, %v849_v32 }
 0x11e   : > { %v813_v39 = vrot.slane %v812_v35, 4  ;;  %v881_v40 = vadd.f32 %v880_v38, %v850_v34 }
 0x120   : > { %v814_v15 = vadd.f32 %v813_v39, %v812_v35  ;;  %v882_v41 = vrot.slane %v881_v40, 4 }
 0x122   : > { %v815_v36 = vrot.slane %v814_v15, 2  ;;  %v883_v44 = vadd.f32 %v882_v41, %v881_v40 }
 0x124   : > { %v816_v45 = vadd.f32 %v815_v36, %v814_v15  ;;  %v884_v46 = vrot.slane %v883_v44, 2 }
 0x126   : > { %v817_v47 = vrot.slane %v816_v45, 1  ;;  %v885_v48 = vadd.f32 %v884_v46, %v883_v44 }
 0x128   : > { %v818_v29 = vadd.f32 %v817_v47, %v816_v45  ;;  %v886_v50 = vrot.slane %v885_v48, 1 }
 0x12a   : > { %v887_v42 = vadd.f32 %v886_v50, %v885_v48  ;;  %888 = vst [vmem:[%s267_s10] sm:$0xff] %v818_v29 }
 0x12c   : > { %889 = vst [vmem:[%s274_s13] sm:$0xff] %v887_v42 }
 0x12d PF: > { %s15_s17 = sadd.s32 1, %s1398_s17   ;;  %s1614_s15 = smov %s1394_s16 }
 0x12e   : > { %p12_p6 = scmp.ge.s32.totalorder %s15_s17, 4   ;;  %s1615_s16 = smov %s1617_s18 }
 0x130   :  { %14 = sbr.rel (!%p12_p6) target bundleno = 2 (0x2), region = 85 }

// kernel: conv_block_fwd.7
= control target key start
LH: loop header
LB: loop body
LE: loop exit
PB: predicated region body
PF: predicated region fallthrough
CT: control target
= control target key end

     0   :  { %8 = vsyncpa [#allocation3], 0  ;;  %s906_s0 = inlined_call_operand.vmem [shape: bf16[512,128], index: 0, kind: input, shape index: {}]   ;;  %s907_s1 = inlined_call_operand.vmem [shape: f32[1,128], index: 1, kind: input, shape index: {}]   ;;  %s908_s2 = inlined_call_operand.vmem [shape: f32[1,128], index: 2, kind: input, shape index: {}]   ;;  %s909_s3 = inlined_call_operand.hbm [shape: f32[512,128], index: 3, kind: output, shape index: {}]  }
   0x1   :  { %10 = vsyncpa [#allocation3 + $0x1], 0  ;;  %s674_s12 = smov 0   ;;  %s676_s13 = smov 0  }
   0x2   :  { %s678_s14 = smov 0   ;;  %s680_s15 = smov 0  }
   0x3 LB: > { %s695_s16 = sadd.s32 4294967295, %s649_s15   ;;  %s454_s17 = sadd.s32 4294967294, %s649_s15   ;;  %s649_s15 = sphi %s680_s15, %s915_s15   ;;  %s645_s14 = sphi %s678_s14, %s914_s14   ;;  %s641_s13 = sphi %s676_s13, %s913_s13   ;;  %s637_s12 = sphi %s674_s12, %s912_s12  }
   0x4   : > { %s699_s18 = sadd.s32 1, %s649_s15   ;;  %s91_s19 = sadd.s32 1, %s645_s14 }
   0x5   : > { %s88_s20 = ssub.s32 %s649_s15, %s699_s18  ;;  %p101_p0 = scmp.ne.s32.totalorder %s645_s14, %s641_s13 }
   0x6   : > { %p89_p1 = scmp.eq.s32.totalorder %s88_s20, 0  ;;  %p102_p2 = scmp.eq.s32.totalorder %s695_s16, 1 }
   0x7   : > { %p107_p3 = scmp.ne.s32.totalorder %s641_s13, %s637_s12  ;;  %p108_p4 = scmp.eq.s32.totalorder %s454_s17, 1 }
   0x8   : > { %s710_s21 = scalar_select %p89_p1, %s645_s14, %s91_s19  }
   0x9   : > { %p712_p5 = por %p102_p2, %p101_p0  ;;  %p716_p6 = por %p108_p4, %p107_p3 }
   0xa   : > { %p457_p7 = scmp.ge.s32.totalorder %s649_s15, 1  ;;  %p141_p8 = scmp.lt.s32.totalorder %s649_s15, 3 }
   0xc   : > { %p142_p9 = pnand %p457_p7, %p141_p8 }
   0xd   : > { %s459_s24 = sshll.u32 (!%p142_p9), %s695_s16, 5  ;;  %s162_s4 = sand.u32 (!%p142_p9), 1, %s641_s13  }
   0xe   : > { %145 = sbr.rel (%p142_p9) target bundleno = 72 (0x48), region = 32  ;;  %p166_p10 = scmp.lt.s32.totalorder (!%p142_p9), %s459_s24, 63 }
   0xf   : > { %s458_s7 = sshll.u32 (!%p142_p9), %s162_s4, 8  ;;  %s468_s9 = sshll.u32 (!%p142_p9), %s695_s16, 12 }
  0x10   : > { %s765_s8 = scalar_lea.vmem (!%p142_p9), [#allocation2], %s458_s7  ;;  %s852_s17 = scalar_lea.hbm (!%p142_p9), %s909_s3, %s468_s9 }
  0x11   : > { %s392_s10 = sshll.u32 (!%p142_p9), %s765_s8, 4  ;;  %s866_s19 = scalar_lea.sflag (!%p142_p9), [#allocation3], %s162_s4  ;;  %s854_s10 = int_to_ptr.vmem [resolvable:$true] %s392_s10 }
  0x12   : > { %s589_s20 = scalar_lea.vmem (!%p142_p9), %s854_s10, 4096 }
  0x13   : > { %s917_s24 = smov (!%p166_p10, %s459_s24), 63  ;;  %v731_v0 = vld [vmem:[%s907_s1] ss:$0 sm:$0xff]  ;;  %p590_p11 = scmp.ne.s32.totalorder %s854_s10, %s589_s20 }
  0x14   : > { %s460_s25 = sshll.u32 %s917_s24, 2  ;;  %v741_v9 = vld [vmem:[%s908_s2] ss:$0 sm:$0xff]  ;;  %s651_s24 = smov [#allocation2]  }
  0x15   : > { %s726_s28 = scalar_lea.vmem %s906_s0, %s460_s25  ;;  %p591_p12 = pnand %p590_p11, %p712_p5 }
  0x16   : > { %v470_v1 = vld [vmem:[%s726_s28] sm:$0xff]   ;;  %v533_v2 = vld [vmem:[%s726_s28 + $0x8] sm:$0xff]   ;;  %v534_v3 = vld [vmem:[%s726_s28 + $0x10] sm:$0xff]   ;;  %s593_s25 = sshll.u32 %s651_s24, 4  ;;  %s594_s25 = int_to_ptr.vmem [resolvable:$false] %s593_s25 }
  0x17   : > { %v471_v4 = vunpack.c.l.bf16 %v470_v1  ;;  %v472_v5 = vunpack.c.h.bf16 %v470_v1  ;;  %v475_v6 = vunpack.c.l.bf16 %v533_v2  ;;  %v476_v7 = vunpack.c.h.bf16 %v533_v2  ;;  %v535_v8 = vld [vmem:[%s726_s28 + $0x18] sm:$0xff]   ;;  %v536_v30 = vld [vmem:[%s726_s28 + $0x20] sm:$0xff]   ;;  %v537_v31 = vld [vmem:[%s726_s28 + $0x28] sm:$0xff]   ;;  %p592_p13 = pneg %p591_p12  ;;  %s595_s26 = scalar_lea.vmem %s594_s25, 8192 }
  0x18   : > { %v479_v10 = vunpack.c.l.bf16 %v534_v3  ;;  %v480_v11 = vunpack.c.h.bf16 %v534_v3  ;;  %v483_v12 = vunpack.c.l.bf16 %v535_v8  ;;  %v484_v13 = vunpack.c.h.bf16 %v535_v8  ;;  %v538_v36 = vld [vmem:[%s726_s28 + $0x30] sm:$0xff]   ;;  %v539_v37 = vld [vmem:[%s726_s28 + $0x38] sm:$0xff]   ;;  %v540_v3 = vld [vmem:[%s726_s28 + $0x40] sm:$0xff]   ;;  %p596_p0 = scmp.lt.s32.totalorder %s854_s10, %s594_s25  ;;  %p597_p1 = scmp.lt.s32.totalorder %s595_s26, %s589_s20 }
  0x19   : > { %v243_v14 = vmul.f32 %v471_v4, %v731_v0  ;;  %v244_v15 = vmul.f32 %v472_v5, %v731_v0  ;;  %v245_v16 = vmul.f32 %v475_v6, %v731_v0  ;;  %v246_v17 = vmul.f32 %v476_v7, %v731_v0  ;;  %v541_v4 = vld [vmem:[%s726_s28 + $0x48] sm:$0xff]  }
  0x1a   : > { %v247_v18 = vmul.f32 %v479_v10, %v731_v0  ;;  %v248_v19 = vmul.f32 %v480_v11, %v731_v0  ;;  %v249_v20 = vmul.f32 %v483_v12, %v731_v0  ;;  %v250_v21 = vmul.f32 %v484_v13, %v731_v0  ;;  %v542_v10 = vld [vmem:[%s726_s28 + $0x50] sm:$0xff]   ;;  %v543_v11 = vld [vmem:[%s726_s28 + $0x58] sm:$0xff]   ;;  %p598_p2 = por %p597_p1, %p596_p0 }
  0x1b   : > { %v282_v22 = vadd.f32 %v741_v9, %v243_v14  ;;  %v283_v23 = vadd.f32 %v741_v9, %v244_v15  ;;  %v284_v24 = vadd.f32 %v741_v9, %v245_v16  ;;  %v285_v25 = vadd.f32 %v741_v9, %v246_v17 }
  0x1c   : > { %v286_v26 = vadd.f32 %v741_v9, %v247_v18  ;;  %v287_v27 = vadd.f32 %v741_v9, %v248_v19  ;;  %v288_v28 = vadd.f32 %v741_v9, %v249_v20  ;;  %v289_v29 = vadd.f32 %v741_v9, %v250_v21  ;;  %p599_p3 = pnand %p598_p2, %p592_p13 }
  0x1d   : > { %v314_v32 = vmax.f32 %v282_v22, 0.0  ;;  %v315_v33 = vmax.f32 %v283_v23, 0.0  ;;  %v316_v34 = vmax.f32 %v284_v24, 0.0  ;;  %v317_v35 = vmax.f32 %v285_v25, 0.0 }
  0x1e   : > { %v318_v38 = vmax.f32 %v286_v26, 0.0  ;;  %v319_v39 = vmax.f32 %v287_v27, 0.0  ;;  %v320_v40 = vmax.f32 %v288_v28, 0.0  ;;  %v321_v41 = vmax.f32 %v289_v29, 0.0 }
  0x1f   : > { %346 = vst [vmem:[%s765_s8] sm:$0xff] %v314_v32  ;;  %347 = vst [vmem:[%s765_s8 + $0x8] sm:$0xff] %v315_v33  ;;  %v487_v42 = vunpack.c.l.bf16 %v536_v30  ;;  %v488_v43 = vunpack.c.h.bf16 %v536_v30  ;;  %v491_v44 = vunpack.c.l.bf16 %v537_v31  ;;  %v492_v45 = vunpack.c.h.bf16 %v537_v31 }
  0x20   : > { %348 = vst [vmem:[%s765_s8 + $0x10] sm:$0xff] %v316_v34  ;;  %349 = vst [vmem:[%s765_s8 + $0x18] sm:$0xff] %v317_v35  ;;  %v495_v46 = vunpack.c.l.bf16 %v538_v36  ;;  %v496_v47 = vunpack.c.h.bf16 %v538_v36  ;;  %v499_v48 = vunpack.c.l.bf16 %v539_v37  ;;  %v500_v49 = vunpack.c.h.bf16 %v539_v37 }
  0x21   : > { %350 = vst [vmem:[%s765_s8 + $0x20] sm:$0xff] %v318_v38  ;;  %351 = vst [vmem:[%s765_s8 + $0x28] sm:$0xff] %v319_v39  ;;  %v251_v50 = vmul.f32 %v487_v42, %v731_v0  ;;  %v252_v51 = vmul.f32 %v488_v43, %v731_v0  ;;  %v253_v52 = vmul.f32 %v491_v44, %v731_v0  ;;  %v503_v16 = vunpack.c.l.bf16 %v540_v3 }
  0x22   : > { %352 = vst [vmem:[%s765_s8 + $0x30] sm:$0xff] %v320_v40  ;;  %353 = vst [vmem:[%s765_s8 + $0x38] sm:$0xff] %v321_v41  ;;  %v254_v53 = vmul.f32 %v492_v45, %v731_v0  ;;  %v255_v54 = vmul.f32 %v495_v46, %v731_v0  ;;  %v256_v55 = vmul.f32 %v496_v47, %v731_v0  ;;  %v504_v17 = vunpack.c.h.bf16 %v540_v3  ;;  %v544_v40 = vld [vmem:[%s726_s28 + $0x60] sm:$0xff]   ;;  %v545_v41 = vld [vmem:[%s726_s28 + $0x68] sm:$0xff]  }
  0x23   : > { %v257_v56 = vmul.f32 %v499_v48, %v731_v0  ;;  %v258_v57 = vmul.f32 %v500_v49, %v731_v0  ;;  %v290_v58 = vadd.f32 %v741_v9, %v251_v50  ;;  %v291_v59 = vadd.f32 %v741_v9, %v252_v51  ;;  %v546_v46 = vld [vmem:[%s726_s28 + $0x70] sm:$0xff]   ;;  %v547_v47 = vld [vmem:[%s726_s28 + $0x78] sm:$0xff]  }
  0x24   : > { %v292_v60 = vadd.f32 %v741_v9, %v253_v52  ;;  %v293_v61 = vadd.f32 %v741_v9, %v254_v53  ;;  %v294_v62 = vadd.f32 %v741_v9, %v255_v54  ;;  %v295_v63 = vadd.f32 %v741_v9, %v256_v55 }
  0x25   : > { %v296_v1 = vadd.f32 %v741_v9, %v257_v56  ;;  %v297_v2 = vadd.f32 %v741_v9, %v258_v57  ;;  %v322_v5 = vmax.f32 %v290_v58, 0.0  ;;  %v323_v6 = vmax.f32 %v291_v59, 0.0 }
  0x26   : > { %v324_v7 = vmax.f32 %v292_v60, 0.0  ;;  %v325_v8 = vmax.f32 %v293_v61, 0.0  ;;  %v326_v12 = vmax.f32 %v294_v62, 0.0  ;;  %v327_v13 = vmax.f32 %v295_v63, 0.0 }
  0x27   : > { %v328_v14 = vmax.f32 %v296_v1, 0.0  ;;  %v329_v15 = vmax.f32 %v297_v2, 0.0  ;;  %354 = vst [vmem:[%s765_s8 + $0x40] sm:$0xff] %v322_v5  ;;  %355 = vst [vmem:[%s765_s8 + $0x48] sm:$0xff] %v323_v6  ;;  %v507_v18 = vunpack.c.l.bf16 %v541_v4  ;;  %v508_v19 = vunpack.c.h.bf16 %v541_v4 }
  0x28   : > { %356 = vst [vmem:[%s765_s8 + $0x50] sm:$0xff] %v324_v7  ;;  %357 = vst [vmem:[%s765_s8 + $0x58] sm:$0xff] %v325_v8  ;;  %v511_v20 = vunpack.c.l.bf16 %v542_v10  ;;  %v512_v21 = vunpack.c.h.bf16 %v542_v10  ;;  %v515_v22 = vunpack.c.l.bf16 %v543_v11  ;;  %v516_v23 = vunpack.c.h.bf16 %v543_v11 }
  0x29   : > { %358 = vst [vmem:[%s765_s8 + $0x60] sm:$0xff] %v326_v12  ;;  %359 = vst [vmem:[%s765_s8 + $0x68] sm:$0xff] %v327_v13  ;;  %v259_v24 = vmul.f32 %v503_v16, %v731_v0  ;;  %v260_v25 = vmul.f32 %v504_v17, %v731_v0  ;;  %v261_v26 = vmul.f32 %v507_v18, %v731_v0  ;;  %v519_v52 = vunpack.c.l.bf16 %v544_v40 }
  0x2a   : > { %360 = vst [vmem:[%s765_s8 + $0x70] sm:$0xff] %v328_v14  ;;  %361 = vst [vmem:[%s765_s8 + $0x78] sm:$0xff] %v329_v15  ;;  %v262_v27 = vmul.f32 %v508_v19, %v731_v0  ;;  %v263_v28 = vmul.f32 %v511_v20, %v731_v0  ;;  %v264_v29 = vmul.f32 %v512_v21, %v731_v0  ;;  %v520_v53 = vunpack.c.h.bf16 %v544_v40 }
  0x2b   : > { %v265_v30 = vmul.f32 %v515_v22, %v731_v0  ;;  %v266_v31 = vmul.f32 %v516_v23, %v731_v0  ;;  %v298_v32 = vadd.f32 %v741_v9, %v259_v24  ;;  %v299_v33 = vadd.f32 %v741_v9, %v260_v25 }
  0x2c   : > { %v300_v34 = vadd.f32 %v741_v9, %v261_v26  ;;  %v301_v35 = vadd.f32 %v741_v9, %v262_v27  ;;  %v302_v36 = vadd.f32 %v741_v9, %v263_v28  ;;  %v303_v37 = vadd.f32 %v741_v9, %v264_v29 }
  0x2d   : > { %v304_v38 = vadd.f32 %v741_v9, %v265_v30  ;;  %v305_v39 = vadd.f32 %v741_v9, %v266_v31  ;;  %v330_v42 = vmax.f32 %v298_v32, 0.0  ;;  %v331_v43 = vmax.f32 %v299_v33, 0.0 }
  0x2e   : > { %v332_v44 = vmax.f32 %v300_v34, 0.0  ;;  %v333_v45 = vmax.f32 %v301_v35, 0.0  ;;  %v334_v48 = vmax.f32 %v302_v36, 0.0  ;;  %v335_v49 = vmax.f32 %v303_v37, 0.0 }
  0x2f   : > { %v336_v50 = vmax.f32 %v304_v38, 0.0  ;;  %v337_v51 = vmax.f32 %v305_v39, 0.0  ;;  %362 = vst [vmem:[%s765_s8 + $0x80] sm:$0xff] %v330_v42  ;;  %363 = vst [vmem:[%s765_s8 + $0x88] sm:$0xff] %v331_v43  ;;  %v523_v54 = vunpack.c.l.bf16 %v545_v41  ;;  %v524_v55 = vunpack.c.h.bf16 %v545_v41 }
  0x30   : > { %364 = vst [vmem:[%s765_s8 + $0x90] sm:$0xff] %v332_v44  ;;  %365 = vst [vmem:[%s765_s8 + $0x98] sm:$0xff] %v333_v45  ;;  %v527_v56 = vunpack.c.l.bf16 %v546_v46  ;;  %v528_v57 = vunpack.c.h.bf16 %v546_v46  ;;  %v531_v58 = vunpack.c.l.bf16 %v547_v47  ;;  %v532_v59 = vunpack.c.h.bf16 %v547_v47 }
  0x31   : > { %366 = vst [vmem:[%s765_s8 + $0xa0] sm:$0xff] %v334_v48  ;;  %367 = vst [vmem:[%s765_s8 + $0xa8] sm:$0xff] %v335_v49  ;;  %v267_v60 = vmul.f32 %v519_v52, %v731_v0  ;;  %v268_v61 = vmul.f32 %v520_v53, %v731_v0  ;;  %v269_v62 = vmul.f32 %v523_v54, %v731_v0 }
  0x32   : > { %368 = vst [vmem:[%s765_s8 + $0xb0] sm:$0xff] %v336_v50  ;;  %369 = vst [vmem:[%s765_s8 + $0xb8] sm:$0xff] %v337_v51  ;;  %v270_v63 = vmul.f32 %v524_v55, %v731_v0  ;;  %v271_v1 = vmul.f32 %v527_v56, %v731_v0  ;;  %v272_v2 = vmul.f32 %v528_v57, %v731_v0 }
  0x33   : > { %v273_v3 = vmul.f32 %v531_v58, %v731_v0  ;;  %v274_v4 = vmul.f32 %v532_v59, %v731_v0  ;;  %v306_v5 = vadd.f32 %v741_v9, %v267_v60  ;;  %v307_v6 = vadd.f32 %v741_v9, %v268_v61 }
  0x34   : > { %v308_v7 = vadd.f32 %v741_v9, %v269_v62  ;;  %v309_v8 = vadd.f32 %v741_v9, %v270_v63  ;;  %v310_v10 = vadd.f32 %v741_v9, %v271_v1  ;;  %v311_v11 = vadd.f32 %v741_v9, %v272_v2 }
  0x35   : > { %v312_v0 = vadd.f32 %v741_v9, %v273_v3  ;;  %v313_v12 = vadd.f32 %v741_v9, %v274_v4  ;;  %v338_v13 = vmax.f32 %v306_v5, 0.0  ;;  %v339_v14 = vmax.f32 %v307_v6, 0.0 }
  0x36   : > { %v340_v15 = vmax.f32 %v308_v7, 0.0  ;;  %v341_v16 = vmax.f32 %v309_v8, 0.0  ;;  %v342_v17 = vmax.f32 %v310_v10, 0.0  ;;  %v343_v9 = vmax.f32 %v311_v11, 0.0 }
  0x37   : > { %v344_v18 = vmax.f32 %v312_v0, 0.0  ;;  %v345_v19 = vmax.f32 %v313_v12, 0.0  ;;  %370 = vst [vmem:[%s765_s8 + $0xc0] sm:$0xff] %v338_v13  ;;  %371 = vst [vmem:[%s765_s8 + $0xc8] sm:$0xff] %v339_v14 }
  0x38   : > { %372 = vst [vmem:[%s765_s8 + $0xd0] sm:$0xff] %v340_v15  ;;  %373 = vst [vmem:[%s765_s8 + $0xd8] sm:$0xff] %v341_v16 }
  0x39   : > { %374 = vst [vmem:[%s765_s8 + $0xe0] sm:$0xff] %v342_v17  ;;  %375 = vst [vmem:[%s765_s8 + $0xe8] sm:$0xff] %v343_v9 }
  0x3a   : > { %376 = vst [vmem:[%s765_s8 + $0xf0] sm:$0xff] %v344_v18  ;;  %377 = vst [vmem:[%s765_s8 + $0xf8] sm:$0xff] %v345_v19 }
  0x3b   : > { %602 = shalt.err (!%p599_p3)
}
  0x3c   : > { %s603_s27 = scalar_lea.hbm %s852_s17, 4096  ;;  %s607_s30 = scalar_lea.hbm %s909_s3, 8192 }
  0x3d   : > { %p604_p4 = scmp.ne.s32.totalorder %s852_s17, %s603_s27  ;;  %p608_p9 = scmp.lt.s32.totalorder %s852_s17, %s909_s3 }
  0x3e   : > { %p609_p10 = scmp.lt.s32.totalorder %s607_s30, %s603_s27 }
  0x3f   : > { %p605_p7 = pnand %p604_p4, %p712_p5 }
  0x40   : > { %p610_p11 = por %p609_p10, %p608_p9 }
  0x41   : > { %p606_p8 = pneg %p605_p7 }
  0x43   : > { %p611_p12 = pnand %p610_p11, %p606_p8 }
  0x45   : > { %614 = shalt.err (!%p611_p12)
}
  0x46   : > { %s652_s6 = smov 128   ;;  %s653_s7 = smov 8  }
  0x47   : > { %548 = dma.vmem_to_hbm [thread:$0]  (%p712_p5), %s854_s10, 4096, %s852_s17, %s866_s19, %s652_s6, %s652_s6, %s653_s7  }
  0x48 PF: > { %p554_p13 = scmp.ge.s32.totalorder %s649_s15, 2  ;;  %s407_s8 = sand.u32 1, %s637_s12  }
  0x49   : > { %s408_s9 = scalar_lea.sflag [#allocation3], %s407_s8 }
  0x4a   : > { %p551_p0 = pnand %p554_p13, %p716_p6 }
  0x4c   : > { %p552_p1 = pneg %p551_p0 }
  0x4e   : > { %632 = dma.done.wait (%p552_p1), %s408_s9, 4096  }
  0x4f   : > { %634 = vsyncadd (%p552_p1), %s408_s9, 4294963200  ;;  %p13_p2 = scmp.ge.s32.totalorder %s699_s18, 4   ;;  %s912_s12 = smov %s641_s13 }
  0x50   : > { %s913_s13 = smov %s645_s14  ;;  %s914_s14 = smov %s710_s21 }
  0x51   : > { %s915_s15 = smov %s699_s18  ;;  %15 = sbr.rel (!%p13_p2) target bundleno = 3 (0x3), region = 67 }
  0x56   :  { %413 = vsyncpa [#allocation3], 1 }
  0x57   :  { %415 = vsyncpa [#allocation3 + $0x1], 1 }

// kernel: conv_block_fwd.6
= control target key start
LH: loop header
LB: loop body
LE: loop exit
PB: predicated region body
PF: predicated region fallthrough
CT: control target
= control target key end

     0   :  { %s2131_s15 = smov 0   ;;  %s2133_s16 = smov 0   ;;  %s2362_s0 = inlined_call_operand.vmem [shape: bf16[512,288], index: 0, kind: input, shape index: {}]   ;;  %s2363_s1 = inlined_call_operand.vmem [shape: bf16[288,128], index: 1, kind: input, shape index: {}]   ;;  %s2364_s2 = inlined_call_operand.vmem [shape: bf16[512,128], index: 2, kind: output, shape index: {0}]   ;;  %s2365_s3 = inlined_call_operand.vmem [shape: f32[16,128], index: 3, kind: output, shape index: {1}]   ;;  %s2366_s4 = inlined_call_operand.vmem [shape: f32[16,128], index: 4, kind: output, shape index: {2}]  }
   0x1   :  { %s2135_s17 = smov 0  }
   0x2 LB: > { %s27_s18 = sadd.s32 1, %s2100_s16  ;;  %p1543_p0 = scmp.ge.s32.totalorder %s2104_s17, 1  ;;  %s2104_s17 = sphi %s2135_s17, %s15_s17   ;;  %s2100_s16 = sphi %s2133_s16, %s2368_s16   ;;  %s2096_s15 = sphi %s2131_s15, %s2367_s15  }
   0x3   : > { %p29_p1 = scmp.ge.s32.totalorder %s27_s18, 2  ;;  %p196_p2 = scmp.lt.s32.totalorder %s2104_s17, 3 }
   0x5   : > { %s2370_s18 = smov (%p29_p1, %s27_s18), 0  ;;  %p197_p3 = pnand %p1543_p0, %p196_p2 }
   0x6   : > { %s1544_s21 = sshll.u32 (!%p197_p3), %s2096_s15, 5  ;;  %p264_p5 = scmp.lt.s32.totalorder (!%p197_p3), %s2096_s15, 1 }
   0x7   : > { %200 = sbr.rel (%p197_p3) target bundleno = 369 (0x171), region = 28  ;;  %p245_p4 = scmp.lt.s32.totalorder (!%p197_p3), %s1544_s21, 63 }
   0xc   : > { %v2000_v0 = vld [vmem:[%s2363_s1 + $0x78] sm:$0xff]   ;;  %v2002_v2 = vld [vmem:[%s2363_s1 + $0x70] sm:$0xff]   ;;  %v2004_v4 = vld [vmem:[%s2363_s1 + $0x68] sm:$0xff]   ;;  %s2372_s21 = smov (!%p245_p4, %s1544_s21), 63  ;;  %vm727_vm0 = vcmask 261120   ;;  %s2374_s15 = smov (!%p264_p5, %s2096_s15), 1 }
   0xd   : > { %v2001_v1 = vld [vmem:[%s2363_s1 + $0x38] sm:$0xff]   ;;  %1793 = vmatprep.subr.bf16.mxu0 %v2000_v0  ;;  %1959 = vmatprep.subr.bf16.mxu1 %v2000_v0  ;;  %v2003_v3 = vld [vmem:[%s2363_s1 + $0x30] sm:$0xff]   ;;  %v2005_v5 = vld [vmem:[%s2363_s1 + $0x28] sm:$0xff]   ;;  %s1975_s8 = smul.u32 12, %s2372_s21  ;;  %s1547_s13 = sshll.u32 %s2372_s21, 2 }
   0xe   : > { %1794 = vmatpush3.bf16.msra.mxu0 %v2001_v1  ;;  %1967 = vmatpush3.bf16.msra.mxu1 %v2001_v1  ;;  %v2006_v6 = vld [vmem:[%s2363_s1 + $0x60] sm:$0xff]   ;;  %v2008_v8 = vld [vmem:[%s2363_s1 + $0x58] sm:$0xff]   ;;  %v2010_v10 = vld [vmem:[%s2363_s1 + $0x50] sm:$0xff]   ;;  %s2300_s20 = scalar_lea.vmem %s2364_s2, %s1547_s13  ;;  %s1548_s21 = sshll.u32 %s2374_s15, 3 }
   0xf   : > { %1795 = vmatprep.subr.bf16.mxu0 %v2002_v2  ;;  %1960 = vmatprep.subr.bf16.mxu1 %v2002_v2  ;;  %v2007_v7 = vld [vmem:[%s2363_s1 + $0x20] sm:$0xff]   ;;  %s2185_s19 = scalar_lea.vmem %s2362_s0, %s1975_s8  ;;  %v2009_v9 = vld [vmem:[%s2363_s1 + $0x18] sm:$0xff]   ;;  %v2011_v13 = vld [vmem:[%s2363_s1 + $0x10] sm:$0xff]   ;;  %s270_s24 = scalar_lea.vmem %s2365_s3, %s1548_s21 }
  0x10   : > { %v2018_v11 = vld [vmem:[%s2185_s19 + $0x4] ss:$12 sps:$4 sm:$0xff]   ;;  %v2012_v14 = vld [vmem:[%s2363_s1 + $0x48] sm:$0xff]   ;;  %v2029_v26 = vld [vmem:[%s2185_s19 + $0x34] ss:$12 sps:$4 sm:$0xff]   ;;  %s277_s27 = scalar_lea.vmem %s2366_s4, %s1548_s21 }
  0x11   : > { %v2021_v12 = vld [vmem:[%s2185_s19 + $0x124] ss:$12 sps:$4 sm:$0xff]   ;;  %808 = vmatprep.mubr.bf16.mxu0 %v2018_v11  ;;  %v2013_v15 = vld [vmem:[%s2363_s1 + $0x8] sm:$0xff]   ;;  %v2031_v27 = vld [vmem:[%s2185_s19 + $0x154] ss:$12 sps:$4 sm:$0xff]  }
  0x12   : > { %1796 = vmatpush3.bf16.msra.mxu0 %v2003_v3  ;;  %1968 = vmatpush3.bf16.msra.mxu1 %v2003_v3  ;;  %v2014_v16 = vld [vmem:[%s2363_s1 + $0x40] sm:$0xff]   ;;  %v2028_v18 = vld [vmem:[%s2363_s1 + $0x88] sm:$0xff]   ;;  %v2033_v28 = vld [vmem:[%s2185_s19 + $0x30] ss:$12 sps:$4 sm:$0xff]  }
  0x13   : > { %1797 = vmatprep.subr.bf16.mxu0 %v2004_v4  ;;  %1961 = vmatprep.subr.bf16.mxu1 %v2004_v4  ;;  %v2015_v17 = vld [vmem:[%s2363_s1] sm:$0xff]   ;;  %v2022_v21 = vld [vmem:[%s2185_s19 + $0x1c] ss:$12 sps:$4 sm:$0xff]   ;;  %v2035_v30 = vld [vmem:[%s2185_s19 + $0x4c] ss:$12 sps:$4 sm:$0xff]  }
  0x14   : > { %904 = vmatprep.mubr.bf16.mxu1 %v2021_v12  ;;  %v2016_v19 = vld [vmem:[%s2185_s19] ss:$12 sps:$4 sm:$0xff]   ;;  %v2024_v22 = vld [vmem:[%s2185_s19 + $0x13c] ss:$12 sps:$4 sm:$0xff]   ;;  %v2026_v24 = vld [vmem:[%s2185_s19 + $0x18] ss:$12 sps:$4 sm:$0xff]  }
  0x15   : > { %v2019_v20 = vld [vmem:[%s2185_s19 + $0x120] ss:$12 sps:$4 sm:$0xff]   ;;  %v2027_v25 = vld [vmem:[%s2185_s19 + $0x138] ss:$12 sps:$4 sm:$0xff]   ;;  %v2034_v29 = vld [vmem:[%s2185_s19 + $0x150] ss:$12 sps:$4 sm:$0xff]  }
  0x16   : > { %1798 = vmatpush3.bf16.msra.mxu0 %v2005_v5  ;;  %1969 = vmatpush3.bf16.msra.mxu1 %v2005_v5  ;;  %v2041_v23 = vld [vmem:[%s2363_s1 + $0x80] sm:$0xff]   ;;  %v2037_v31 = vld [vmem:[%s2185_s19 + $0x16c] ss:$12 sps:$4 sm:$0xff]   ;;  %v2039_v32 = vld [vmem:[%s2185_s19 + $0x48] ss:$12 sps:$4 sm:$0xff]  }
  0x17   : > { %1799 = vmatprep.subr.bf16.mxu0 %v2006_v6  ;;  %1962 = vmatprep.subr.bf16.mxu1 %v2006_v6  ;;  %v2040_v33 = vld [vmem:[%s2185_s19 + $0x168] ss:$12 sps:$4 sm:$0xff]   ;;  %v2042_v34 = vld [vmem:[%s2185_s19 + $0x64] ss:$12 sps:$4 sm:$0xff]   ;;  %v2045_v36 = vld [vmem:[%s2185_s19 + $0x60] ss:$12 sps:$4 sm:$0xff]  }
  0x18   : > { %v2044_v35 = vld [vmem:[%s2185_s19 + $0x8] ss:$12 sps:$4 sm:$0xff]   ;;  %v2046_v37 = vld [vmem:[%s2185_s19 + $0x20] ss:$12 sps:$4 sm:$0xff]   ;;  %v2049_v39 = vld [vmem:[%s2185_s19 + $0x38] ss:$12 sps:$4 sm:$0xff]  }
  0x19   : > { %v2047_v38 = vld [vmem:[%s2185_s19 + $0x7c] ss:$12 sps:$4 sm:$0xff]   ;;  %v2050_v40 = vld [vmem:[%s2185_s19 + $0x78] ss:$12 sps:$4 sm:$0xff]   ;;  %v2052_v42 = vld [vmem:[%s2185_s19 + $0x94] ss:$12 sps:$4 sm:$0xff]  }
  0x1a   : > { %1800 = vmatpush3.bf16.msra.mxu0 %v2007_v7  ;;  %1970 = vmatpush3.bf16.msra.mxu1 %v2007_v7  ;;  %v2051_v41 = vld [vmem:[%s2185_s19 + $0x50] ss:$12 sps:$4 sm:$0xff]   ;;  %v2054_v43 = vld [vmem:[%s2185_s19 + $0x68] ss:$12 sps:$4 sm:$0xff]   ;;  %v2056_v45 = vld [vmem:[%s2185_s19 + $0x80] ss:$12 sps:$4 sm:$0xff]  }
  0x1b   : > { %1801 = vmatprep.subr.bf16.mxu0 %v2008_v8  ;;  %1963 = vmatprep.subr.bf16.mxu1 %v2008_v8  ;;  %v2055_v44 = vld [vmem:[%s2185_s19 + $0x90] ss:$12 sps:$4 sm:$0xff]   ;;  %v2057_v46 = vld [vmem:[%s2185_s19 + $0xac] ss:$12 sps:$4 sm:$0xff]   ;;  %v2060_v48 = vld [vmem:[%s2185_s19 + $0xa8] ss:$12 sps:$4 sm:$0xff]  }
  0x1c   : > { %v2059_v47 = vld [vmem:[%s2185_s19 + $0x98] ss:$12 sps:$4 sm:$0xff]   ;;  %v2061_v49 = vld [vmem:[%s2185_s19 + $0xb0] ss:$12 sps:$4 sm:$0xff]   ;;  %v2064_v51 = vld [vmem:[%s2185_s19 + $0xc8] ss:$12 sps:$4 sm:$0xff]  }
  0x1d   : > { %v2062_v50 = vld [vmem:[%s2185_s19 + $0xc4] ss:$12 sps:$4 sm:$0xff]   ;;  %v2065_v52 = vld [vmem:[%s2185_s19 + $0xc0] ss:$12 sps:$4 sm:$0xff]   ;;  %v2067_v54 = vld [vmem:[%s2185_s19 + $0xdc] ss:$12 sps:$4 sm:$0xff]  }
  0x1e   : > { %1802 = vmatpush3.bf16.msra.mxu0 %v2009_v9  ;;  %1971 = vmatpush3.bf16.msra.mxu1 %v2009_v9  ;;  %v2066_v53 = vld [vmem:[%s2185_s19 + $0xe0] ss:$12 sps:$4 sm:$0xff]   ;;  %v2069_v55 = vld [vmem:[%s2185_s19 + $0xf8] ss:$12 sps:$4 sm:$0xff]   ;;  %v2071_v57 = vld [vmem:[%s2185_s19 + $0x110] ss:$12 sps:$4 sm:$0xff]  }
  0x1f   : > { %1803 = vmatprep.subr.bf16.mxu0 %v2010_v10  ;;  %1964 = vmatprep.subr.bf16.mxu1 %v2010_v10  ;;  %v2070_v56 = vld [vmem:[%s2185_s19 + $0xd8] ss:$12 sps:$4 sm:$0xff]   ;;  %v2072_v58 = vld [vmem:[%s2185_s19 + $0xf4] ss:$12 sps:$4 sm:$0xff]   ;;  %v2075_v60 = vld [vmem:[%s2185_s19 + $0xf0] ss:$12 sps:$4 sm:$0xff]  }
  0x20   : > { %v2074_v59 = vld [vmem:[%s2185_s19 + $0x128] ss:$12 sps:$4 sm:$0xff]   ;;  %v2076_v61 = vld [vmem:[%s2185_s19 + $0x140] ss:$12 sps:$4 sm:$0xff]   ;;  %v2079_v63 = vld [vmem:[%s2185_s19 + $0x158] ss:$12 sps:$4 sm:$0xff]  }
  0x21   : > { %v2077_v62 = vld [vmem:[%s2185_s19 + $0x10c] ss:$12 sps:$4 sm:$0xff]   ;;  %v2080_v0 = vld [vmem:[%s2185_s19 + $0x108] ss:$12 sps:$4 sm:$0xff]   ;;  %v2081_v1 = vld [vmem:[%s2185_s19 + $0x170] ss:$12 sps:$4 sm:$0xff]  }
  0x22   : > { %1804 = vmatpush3.bf16.msra.mxu0 %v2011_v13  ;;  %1972 = vmatpush3.bf16.msra.mxu1 %v2011_v13 }
  0x23   : > { %1805 = vmatprep.subr.bf16.mxu0 %v2012_v14  ;;  %1965 = vmatprep.subr.bf16.mxu1 %v2012_v14 }
  0x26   : > { %1806 = vmatpush3.bf16.msra.mxu0 %v2013_v15  ;;  %1973 = vmatpush3.bf16.msra.mxu1 %v2013_v15 }
  0x27   : > { %1807 = vmatprep.subr.bf16.mxu0 %v2014_v16  ;;  %1966 = vmatprep.subr.bf16.mxu1 %v2014_v16 }
  0x2a   : > { %1808 = vmatpush3.bf16.msra.mxu0 %v2015_v17  ;;  %1974 = vmatpush3.bf16.msra.mxu1 %v2015_v17 }
  0x2b   : > { %1923 = vmatprep.subr.bf16.mxu1 %v2028_v18 }
  0x2d   : > { %809 = vmatmul.mubr.bf16.vlgmr.msra.gmra.mxu0 %v2016_v19  ;;  %905 = vmatmul.mubr.bf16.vlgmr.msra.gmra.mxu1 %v2019_v20 }
  0x2e   : > { %816 = vmatprep.mubr.bf16.mxu0 %v2022_v21  ;;  %912 = vmatprep.mubr.bf16.mxu1 %v2024_v22 }
  0x2f   : > { %1924 = vmatpush3.bf16.msra.mxu1 %v2028_v18 }
  0x30   : > { %1925 = vmatprep.subr.bf16.mxu1 %v2041_v23 }
  0x33   : > { %1926 = vmatpush3.bf16.msra.mxu1 %v2041_v23 }
  0x35   : > { %817 = vmatmul.mubr.bf16.gmra.mxu0 %v2026_v24  ;;  %913 = vmatmul.mubr.bf16.gmra.mxu1 %v2027_v25 }
  0x36   : > { %824 = vmatprep.mubr.bf16.mxu0 %v2029_v26  ;;  %920 = vmatprep.mubr.bf16.mxu1 %v2031_v27 }
  0x3d   : > { %825 = vmatmul.mubr.bf16.gmra.mxu0 %v2033_v28  ;;  %921 = vmatmul.mubr.bf16.gmra.mxu1 %v2034_v29 }
  0x3e   : > { %832 = vmatprep.mubr.bf16.mxu0 %v2035_v30  ;;  %928 = vmatprep.mubr.bf16.mxu1 %v2037_v31 }
  0x45   : > { %833 = vmatmul.mubr.bf16.gmra.mxu0 %v2039_v32  ;;  %929 = vmatmul.mubr.bf16.gmra.mxu1 %v2040_v33 }
  0x46   : > { %840 = vmatprep.mubr.bf16.mxu0 %v2042_v34  ;;  %1927 = vmatprep.mubr.msk.bf16.mxu1 %vm727_vm0, %v2044_v35 }
  0x4d   : > { %841 = vmatmul.mubr.bf16.gmra.mxu0 %v2045_v36  ;;  %1928 = vmatmul.mubr.msk.bf16.vlgmr.msra.gmra.mxu1 %vm727_vm0, %v2046_v37 }
  0x4e   : > { %848 = vmatprep.mubr.bf16.mxu0 %v2047_v38  ;;  %1931 = vmatprep.mubr.msk.bf16.mxu1 %vm727_vm0, %v2049_v39 }
  0x55   : > { %849 = vmatmul.mubr.bf16.gmra.mxu0 %v2050_v40  ;;  %1932 = vmatmul.mubr.msk.bf16.gmra.mxu1 %vm727_vm0, %v2051_v41 }
  0x56   : > { %856 = vmatprep.mubr.bf16.mxu0 %v2052_v42  ;;  %1935 = vmatprep.mubr.msk.bf16.mxu1 %vm727_vm0, %v2054_v43 }
  0x5d   : > { %857 = vmatmul.mubr.bf16.gmra.mxu0 %v2055_v44  ;;  %1936 = vmatmul.mubr.msk.bf16.gmra.mxu1 %vm727_vm0, %v2056_v45 }
  0x5e   : > { %864 = vmatprep.mubr.bf16.mxu0 %v2057_v46  ;;  %1939 = vmatprep.mubr.msk.bf16.mxu1 %vm727_vm0, %v2059_v47 }
  0x65   : > { %865 = vmatmul.mubr.bf16.gmra.mxu0 %v2060_v48  ;;  %1940 = vmatmul.mubr.msk.bf16.gmra.mxu1 %vm727_vm0, %v2061_v49 }
  0x66   : > { %872 = vmatprep.mubr.bf16.mxu0 %v2062_v50  ;;  %1943 = vmatprep.mubr.msk.bf16.mxu1 %vm727_vm0, %v2064_v51 }
  0x6d   : > { %873 = vmatmul.mubr.bf16.gmra.mxu0 %v2065_v52  ;;  %1944 = vmatmul.mubr.msk.bf16.gmra.mxu1 %vm727_vm0, %v2066_v53 }
  0x6e   : > { %880 = vmatprep.mubr.bf16.mxu0 %v2067_v54  ;;  %1947 = vmatprep.mubr.msk.bf16.mxu1 %vm727_vm0, %v2069_v55 }
  0x75   : > { %881 = vmatmul.mubr.bf16.gmra.mxu0 %v2070_v56  ;;  %1948 = vmatmul.mubr.msk.bf16.gmra.mxu1 %vm727_vm0, %v2071_v57 }
  0x76   : > { %888 = vmatprep.mubr.bf16.mxu0 %v2072_v58  ;;  %1951 = vmatprep.mubr.msk.bf16.mxu1 %vm727_vm0, %v2074_v59 }
  0x7d   : > { %889 = vmatmul.mubr.bf16.gmra.mxu0 %v2075_v60  ;;  %1952 = vmatmul.mubr.msk.bf16.gmra.mxu1 %vm727_vm0, %v2076_v61 }
  0x7e   : > { %896 = vmatprep.mubr.bf16.mxu0 %v2077_v62  ;;  %1955 = vmatprep.mubr.msk.bf16.mxu1 %vm727_vm0, %v2079_v63 }
  0x85   : > { %897 = vmatmul.mubr.bf16.gmra.mxu0 %v2080_v0  ;;  %1956 = vmatmul.mubr.msk.bf16.gmra.mxu1 %vm727_vm0, %v2081_v1 }
  0xed   : > { %v1809_v2 = vpop.f32.mrf.mxu0  ;;  %v1881_v3 = vpop.f32.mrf.mxu1 }
  0xef   : > { %v1810_v4 = vpop.f32.mrf.mxu0  ;;  %v1882_v5 = vpop.f32.mrf.mxu1 }
  0xf0   : > { %v2278_v6 = vadd.f32 %v1882_v5, %v1881_v3  ;;  %v1811_v45 = vadd.f32 %v1810_v4, %v1809_v2 }
  0xf1   : > { %v1812_v7 = vpop.f32.mrf.mxu0  ;;  %v1884_v8 = vpop.f32.mrf.mxu1 }
  0xf3   : > { %v1813_v9 = vpop.f32.mrf.mxu0  ;;  %v1885_v10 = vpop.f32.mrf.mxu1 }
  0xf4   : > { %v2280_v11 = vadd.f32 %v1885_v10, %v1884_v8  ;;  %v1814_v50 = vadd.f32 %v1813_v9, %v1812_v7 }
  0xf5   : > { %v1815_v12 = vpop.f32.mrf.mxu0  ;;  %v1887_v13 = vpop.f32.mrf.mxu1 }
  0xf7   : > { %v1816_v14 = vpop.f32.mrf.mxu0  ;;  %v1888_v15 = vpop.f32.mrf.mxu1 }
  0xf8   : > { %v2282_v16 = vadd.f32 %v1888_v15, %v1887_v13  ;;  %v1817_v46 = vadd.f32 %v1816_v14, %v1815_v12 }
  0xf9   : > { %v1818_v17 = vpop.f32.mrf.mxu0  ;;  %v1890_v18 = vpop.f32.mrf.mxu1 }
  0xfb   : > { %v1819_v19 = vpop.f32.mrf.mxu0  ;;  %v1891_v20 = vpop.f32.mrf.mxu1 }
  0xfc   : > { %v2284_v21 = vadd.f32 %v1891_v20, %v1890_v18  ;;  %v1820_v47 = vadd.f32 %v1819_v19, %v1818_v17 }
  0xfd   : > { %v1821_v22 = vpop.f32.mrf.mxu0  ;;  %v1893_v23 = vpop.f32.mrf.mxu1 }
  0xff   : > { %v1822_v24 = vpop.f32.mrf.mxu0  ;;  %v1894_v25 = vpop.f32.mrf.mxu1 }
 0x100   : > { %v2286_v26 = vadd.f32 %v1894_v25, %v1893_v23  ;;  %v1823_v0 = vadd.f32 %v1822_v24, %v1821_v22 }
 0x101   : > { %v1824_v27 = vpop.f32.mrf.mxu0  ;;  %v1896_v28 = vpop.f32.mrf.mxu1 }
 0x103   : > { %v1825_v29 = vpop.f32.mrf.mxu0  ;;  %v1897_v30 = vpop.f32.mrf.mxu1 }
 0x104   : > { %v2288_v31 = vadd.f32 %v1897_v30, %v1896_v28  ;;  %v1826_v19 = vadd.f32 %v1825_v29, %v1824_v27 }
 0x105   : > { %v1827_v32 = vpop.f32.mrf.mxu0  ;;  %v1899_v33 = vpop.f32.mrf.mxu1 }
 0x107   : > { %v1828_v34 = vpop.f32.mrf.mxu0  ;;  %v1900_v35 = vpop.f32.mrf.mxu1 }
 0x108   : > { %v2290_v36 = vadd.f32 %v1900_v35, %v1899_v33  ;;  %v1829_v1 = vadd.f32 %v1828_v34, %v1827_v32 }
 0x109   : > { %v1830_v37 = vpop.f32.mrf.mxu0  ;;  %v2292_v38 = vpop.f32.mrf.mxu1 }
 0x10b   : > { %v1831_v39 = vpop.f32.mrf.mxu0  ;;  %v2294_v40 = vpop.f32.mrf.mxu1 }
 0x10c   : > { %v1832_v4 = vadd.f32 %v1831_v39, %v1830_v37 }
 0x10d   : > { %v1833_v41 = vpop.f32.mrf.mxu0  ;;  %v1929_v42 = vpop.f32.mrf.mxu1 }
 0x10e   : > { %v980_v51 = vadd.f32 %v1929_v42, %v1817_v46 }
 0x10f   : > { %v1834_v43 = vpop.f32.mrf.mxu0  ;;  %v971_v44 = vpop.f32.mrf.mxu1 }
 0x110   : > { %v972_v52 = vadd.f32 %v1811_v45, %v971_v44  ;;  %v1297_v5 = vmul.f32 %v980_v51, %v980_v51  ;;  %v1835_v35 = vadd.f32 %v1834_v43, %v1833_v41 }
 0x111   : > { %v1836_v48 = vpop.f32.mrf.mxu0  ;;  %v1930_v49 = vpop.f32.mrf.mxu1 }
 0x112   : > { %v983_v53 = vadd.f32 %v1930_v49, %v1820_v47  ;;  %v1295_v60 = vmul.f32 %v972_v52, %v972_v52 }
 0x113   : > { %v1837_v54 = vpop.f32.mrf.mxu0  ;;  %v974_v55 = vpop.f32.mrf.mxu1 }
 0x114   : > { %v1706_v56 = vpack.c.bf16 %v983_v53, %v980_v51  ;;  %v975_v57 = vadd.f32 %v1814_v50, %v974_v55  ;;  %v1298_v9 = vmul.f32 %v983_v53, %v983_v53 }
 0x115   : > { %v1839_v58 = vpop.f32.mrf.mxu0  ;;  %v1933_v59 = vpop.f32.mrf.mxu1 }
 0x116   : > { %1778 = vst [vmem:[%s2300_s20 + $0x8] sm:$0xff] %v1706_v56   ;;  %v1701_v61 = vpack.c.bf16 %v975_v57, %v972_v52  ;;  %v1258_v62 = vadd.f32 %v975_v57, %v972_v52  ;;  %v1296_v63 = vmul.f32 %v975_v57, %v975_v57  ;;  %v996_v15 = vadd.f32 %v1933_v59, %v1829_v1 }
 0x117   : > { %v1840_v2 = vpop.f32.mrf.mxu0  ;;  %v987_v3 = vpop.f32.mrf.mxu1 }
 0x118   : > { %1702 = vst [vmem:[%s2300_s20] sm:$0xff] %v1701_v61   ;;  %v1259_v7 = vadd.f32 %v1258_v62, %v980_v51  ;;  %v1327_v8 = vadd.f32 %v1296_v63, %v1295_v60  ;;  %v988_v10 = vadd.f32 %v1823_v0, %v987_v3  ;;  %v1841_v46 = vadd.f32 %v1840_v2, %v1839_v58 }
 0x119   : > { %v1842_v12 = vpop.f32.mrf.mxu0  ;;  %v1934_v13 = vpop.f32.mrf.mxu1  ;;  %v1301_v29 = vmul.f32 %v996_v15, %v996_v15 }
 0x11a   : > { %v1328_v14 = vadd.f32 %v1327_v8, %v1297_v5  ;;  %v1260_v17 = vadd.f32 %v1259_v7, %v983_v53  ;;  %v999_v18 = vadd.f32 %v1934_v13, %v1832_v4  ;;  %v1299_v24 = vmul.f32 %v988_v10, %v988_v10 }
 0x11b   : > { %v1843_v20 = vpop.f32.mrf.mxu0  ;;  %v990_v22 = vpop.f32.mrf.mxu1  ;;  %v1838_v53 = vadd.f32 %v1837_v54, %v1836_v48 }
 0x11c   : > { %v1261_v23 = vadd.f32 %v1260_v17, %v988_v10  ;;  %v1329_v25 = vadd.f32 %v1328_v14, %v1298_v9  ;;  %v1716_v28 = vpack.c.bf16 %v999_v18, %v996_v15  ;;  %v991_v30 = vadd.f32 %v1826_v19, %v990_v22 }
 0x11d   : > { %v1845_v32 = vpop.f32.mrf.mxu0  ;;  %v1937_v33 = vpop.f32.mrf.mxu1  ;;  %v1844_v27 = vadd.f32 %v1843_v20, %v1842_v12  ;;  %v1302_v57 = vmul.f32 %v999_v18, %v999_v18 }
 0x11e   : > { %v1330_v34 = vadd.f32 %v1329_v25, %v1299_v24  ;;  %1780 = vst [vmem:[%s2300_s20 + $0x18] sm:$0xff] %v1716_v28   ;;  %v1711_v37 = vpack.c.bf16 %v991_v30, %v988_v10  ;;  %v1262_v39 = vadd.f32 %v1261_v23, %v991_v30  ;;  %v1300_v42 = vmul.f32 %v991_v30, %v991_v30 }
 0x11f   : > { %v1846_v44 = vpop.f32.mrf.mxu0  ;;  %v1003_v45 = vpop.f32.mrf.mxu1  ;;  %v1012_v55 = vadd.f32 %v1937_v33, %v1841_v46 }
 0x120   : > { %1779 = vst [vmem:[%s2300_s20 + $0x10] sm:$0xff] %v1711_v37   ;;  %v1263_v47 = vadd.f32 %v1262_v39, %v996_v15  ;;  %v1331_v49 = vadd.f32 %v1330_v34, %v1300_v42  ;;  %v1004_v50 = vadd.f32 %v1835_v35, %v1003_v45  ;;  %v1847_v14 = vadd.f32 %v1846_v44, %v1845_v32 }
 0x121   : > { %v1848_v51 = vpop.f32.mrf.mxu0  ;;  %v1938_v52 = vpop.f32.mrf.mxu1  ;;  %v1305_v8 = vmul.f32 %v1012_v55, %v1012_v55 }
 0x122   : > { %v1015_v56 = vadd.f32 %v1938_v52, %v1844_v27  ;;  %v1332_v41 = vadd.f32 %v1331_v49, %v1301_v29  ;;  %v1264_v43 = vadd.f32 %v1263_v47, %v999_v18  ;;  %v1303_v63 = vmul.f32 %v1004_v50, %v1004_v50 }
 0x123   : > { %v1849_v59 = vpop.f32.mrf.mxu0  ;;  %v1006_v60 = vpop.f32.mrf.mxu1 }
 0x124   : > { %v1726_v61 = vpack.c.bf16 %v1015_v56, %v1012_v55  ;;  %v1007_v58 = vadd.f32 %v1838_v53, %v1006_v60  ;;  %v1265_v62 = vadd.f32 %v1264_v43, %v1004_v50  ;;  %v1333_v0 = vadd.f32 %v1332_v41, %v1302_v57 }
 0x125   : > { %v1851_v1 = vpop.f32.mrf.mxu0  ;;  %v1941_v2 = vpop.f32.mrf.mxu1  ;;  %v1850_v15 = vadd.f32 %v1849_v59, %v1848_v51  ;;  %v1306_v25 = vmul.f32 %v1015_v56, %v1015_v56 }
 0x126   : > { %1782 = vst [vmem:[%s2300_s20 + $0x28] sm:$0xff] %v1726_v61   ;;  %v1721_v3 = vpack.c.bf16 %v1007_v58, %v1004_v50  ;;  %v1304_v4 = vmul.f32 %v1007_v58, %v1007_v58  ;;  %v1334_v5 = vadd.f32 %v1333_v0, %v1303_v63  ;;  %v1266_v48 = vadd.f32 %v1265_v62, %v1007_v58 }
 0x127   : > { %v1852_v54 = vpop.f32.mrf.mxu0  ;;  %v1019_v7 = vpop.f32.mrf.mxu1 }
 0x128   : > { %1781 = vst [vmem:[%s2300_s20 + $0x20] sm:$0xff] %v1721_v3   ;;  %v1267_v9 = vadd.f32 %v1266_v48, %v1012_v55  ;;  %v1335_v10 = vadd.f32 %v1334_v5, %v1304_v4  ;;  %v1853_v17 = vadd.f32 %v1852_v54, %v1851_v1  ;;  %v1020_v22 = vadd.f32 %v1847_v14, %v1019_v7 }
 0x129   : > { %v1854_v12 = vpop.f32.mrf.mxu0  ;;  %v1942_v13 = vpop.f32.mrf.mxu1 }
 0x12a   : > { %v1336_v18 = vadd.f32 %v1335_v10, %v1305_v8  ;;  %v1268_v28 = vadd.f32 %v1267_v9, %v1015_v56  ;;  %v1028_v34 = vadd.f32 %v1941_v2, %v1853_v17  ;;  %v1307_v46 = vmul.f32 %v1020_v22, %v1020_v22 }
 0x12b   : > { %v1855_v19 = vpop.f32.mrf.mxu0  ;;  %v1022_v20 = vpop.f32.mrf.mxu1 }
 0x12c   : > { %v1856_v23 = vadd.f32 %v1855_v19, %v1854_v12  ;;  %v1023_v24 = vadd.f32 %v1850_v15, %v1022_v20  ;;  %v1337_v39 = vadd.f32 %v1336_v18, %v1306_v25  ;;  %v1269_v45 = vadd.f32 %v1268_v28, %v1020_v22 }
 0x12d   : > { %v1857_v30 = vpop.f32.mrf.mxu0  ;;  %v1945_v33 = vpop.f32.mrf.mxu1  ;;  %v1309_v62 = vmul.f32 %v1028_v34, %v1028_v34 }
 0x12e   : > { %v1031_v35 = vadd.f32 %v1942_v13, %v1856_v23  ;;  %v1731_v37 = vpack.c.bf16 %v1023_v24, %v1020_v22  ;;  %v1338_v49 = vadd.f32 %v1337_v39, %v1307_v46  ;;  %v1308_v50 = vmul.f32 %v1023_v24, %v1023_v24 }
 0x12f   : > { %v1858_v42 = vpop.f32.mrf.mxu0  ;;  %v1035_v32 = vpop.f32.mrf.mxu1  ;;  %v1270_v55 = vadd.f32 %v1269_v45, %v1023_v24 }
 0x130   : > { %v1736_v44 = vpack.c.bf16 %v1031_v35, %v1028_v34  ;;  %1783 = vst [vmem:[%s2300_s20 + $0x30] sm:$0xff] %v1731_v37   ;;  %v1859_v47 = vadd.f32 %v1858_v42, %v1857_v30  ;;  %v1339_v59 = vadd.f32 %v1338_v49, %v1308_v50  ;;  %v1310_v54 = vmul.f32 %v1031_v35, %v1031_v35 }
 0x131   : > { %v1860_v27 = vpop.f32.mrf.mxu0  ;;  %v1946_v29 = vpop.f32.mrf.mxu1  ;;  %v1271_v63 = vadd.f32 %v1270_v55, %v1028_v34  ;;  %v1904_v55 = vadd.f32 %v2294_v40, %v2292_v38 }
 0x132   : > { %1784 = vst [vmem:[%s2300_s20 + $0x38] sm:$0xff] %v1736_v44   ;;  %v1036_v41 = vadd.f32 %v1859_v47, %v1035_v32  ;;  %v1340_v3 = vadd.f32 %v1339_v59, %v1309_v62 }
 0x133   : > { %v1861_v51 = vpop.f32.mrf.mxu0  ;;  %v1038_v52 = vpop.f32.mrf.mxu1  ;;  %v1272_v7 = vadd.f32 %v1271_v63, %v1031_v35 }
 0x134   : > { %v1862_v53 = vadd.f32 %v1861_v51, %v1860_v27  ;;  %v1311_v13 = vmul.f32 %v1036_v41, %v1036_v41  ;;  %v1341_v14 = vadd.f32 %v1340_v3, %v1310_v54 }
 0x135   : > { %v1863_v56 = vpop.f32.mrf.mxu0  ;;  %v2310_v57 = vpop.f32.mrf.mxu1  ;;  %v1273_v19 = vadd.f32 %v1272_v7, %v1036_v41 }
 0x136   : > { %v1039_v43 = vadd.f32 %v1862_v53, %v1038_v52  ;;  %v1342_v30 = vadd.f32 %v1341_v14, %v1311_v13 }
 0x137   : > { %v1864_v60 = vpop.f32.mrf.mxu0  ;;  %v1051_v61 = vpop.f32.mrf.mxu1 }
 0x138   : > { %v1741_v58 = vpack.c.bf16 %v1039_v43, %v1036_v41  ;;  %v1865_v2 = vadd.f32 %v1864_v60, %v1863_v56  ;;  %v1312_v20 = vmul.f32 %v1039_v43, %v1039_v43 }
 0x139   : > { %v1866_v0 = vpop.f32.mrf.mxu0  ;;  %v2312_v1 = vpop.f32.mrf.mxu1 }
 0x13a   : > { %1785 = vst [vmem:[%s2300_s20 + $0x40] sm:$0xff] %v1741_v58   ;;  %v1044_v10 = vadd.f32 %v1945_v33, %v1865_v2  ;;  %v1274_v33 = vadd.f32 %v1273_v19, %v1039_v43 }
 0x13b   : > { %v1867_v4 = vpop.f32.mrf.mxu0  ;;  %v1054_v5 = vpop.f32.mrf.mxu1 }
 0x13c   : > { %v1868_v48 = vadd.f32 %v1867_v4, %v1866_v0  ;;  %v1313_v34 = vmul.f32 %v1044_v10, %v1044_v10  ;;  %v1275_v46 = vadd.f32 %v1274_v33, %v1044_v10 }
 0x13d   : > { %v1869_v8 = vpop.f32.mrf.mxu0  ;;  %v1953_v9 = vpop.f32.mrf.mxu1 }
 0x13e   : > { %v1047_v12 = vadd.f32 %v1946_v29, %v1868_v48  ;;  %v2317_v25 = vadd.f32 %v1953_v9, %v2282_v16  ;;  %v1343_v16 = vadd.f32 %v1342_v30, %v1312_v20 }
 0x13f   : > { %v1870_v15 = vpop.f32.mrf.mxu0  ;;  %v1067_v17 = vpop.f32.mrf.mxu1 }
 0x140   : > { %v1746_v18 = vpack.c.bf16 %v1047_v12, %v1044_v10  ;;  %v1871_v22 = vadd.f32 %v1870_v15, %v1869_v8  ;;  %v1068_v42 = vadd.f32 %v2278_v6, %v1067_v17  ;;  %v1344_v50 = vadd.f32 %v1343_v16, %v1313_v34 }
 0x141   : > { %v1872_v23 = vpop.f32.mrf.mxu0  ;;  %v1954_v24 = vpop.f32.mrf.mxu1  ;;  %v1276_v51 = vadd.f32 %v1275_v46, %v1047_v12 }
 0x142   : > { %1786 = vst [vmem:[%s2300_s20 + $0x48] sm:$0xff] %v1746_v18   ;;  %v2320_v28 = vadd.f32 %v1954_v24, %v2284_v21  ;;  %v1052_v35 = vadd.f32 %v1871_v22, %v1051_v61  ;;  %v1314_v21 = vmul.f32 %v1047_v12, %v1047_v12  ;;  %v1319_v14 = vmul.f32 %v1068_v42, %v1068_v42 }
 0x143   : > { %v1873_v37 = vpop.f32.mrf.mxu0  ;;  %v1070_v39 = vpop.f32.mrf.mxu1 }
 0x144   : > { %v1766_v32 = vpack.c.bf16 %v2320_v28, %v2317_v25  ;;  %v1874_v44 = vadd.f32 %v1873_v37, %v1872_v23  ;;  %v1071_v45 = vadd.f32 %v2280_v11, %v1070_v39  ;;  %v1315_v52 = vmul.f32 %v1052_v35, %v1052_v35 }
 0x145   : > { %v1875_v27 = vpop.f32.mrf.mxu0  ;;  %v1957_v29 = vpop.f32.mrf.mxu1  ;;  %v1345_v11 = vadd.f32 %v1344_v50, %v1314_v21  ;;  %v1277_v41 = vadd.f32 %v1276_v51, %v1052_v35  ;;  %v1322_v22 = vmul.f32 %v2320_v28, %v2320_v28 }
 0x146   : > { %1790 = vst [vmem:[%s2300_s20 + $0x68] sm:$0xff] %v1766_v32   ;;  %v1055_v47 = vadd.f32 %v1874_v44, %v1054_v5  ;;  %v1761_v49 = vpack.c.bf16 %v1071_v45, %v1068_v42  ;;  %v1092_v58 = vadd.f32 %v1957_v29, %v2290_v36  ;;  %v1320_v17 = vmul.f32 %v1071_v45, %v1071_v45 }
 0x147   : > { %v1876_v6 = vpop.f32.mrf.mxu0  ;;  %v1083_v53 = vpop.f32.mrf.mxu1  ;;  %v1346_v63 = vadd.f32 %v1345_v11, %v1315_v52 }
 0x148   : > { %v1751_v56 = vpack.c.bf16 %v1055_v47, %v1052_v35  ;;  %1789 = vst [vmem:[%s2300_s20 + $0x60] sm:$0xff] %v1761_v49   ;;  %v1877_v43 = vadd.f32 %v1876_v6, %v1875_v27  ;;  %v1316_v61 = vmul.f32 %v1055_v47, %v1055_v47  ;;  %v1278_v0 = vadd.f32 %v1277_v41, %v1055_v47 }
 0x149   : > { %v1878_v59 = vpop.f32.mrf.mxu0  ;;  %v1958_v60 = vpop.f32.mrf.mxu1  ;;  %v1084_v40 = vadd.f32 %v2286_v26, %v1083_v53 }
 0x14a   : > { %1787 = vst [vmem:[%s2300_s20 + $0x50] sm:$0xff] %v1751_v56   ;;  %v1095_v62 = vadd.f32 %v1958_v60, %v1904_v55  ;;  %v1060_v2 = vadd.f32 %v2310_v57, %v1877_v43  ;;  %v1347_v7 = vadd.f32 %v1346_v63, %v1316_v61 }
 0x14b   : > { %v1879_v3 = vpop.f32.mrf.mxu0  ;;  %v1086_v38 = vpop.f32.mrf.mxu1  ;;  %v1323_v30 = vmul.f32 %v1084_v40, %v1084_v40 }
 0x14c   : > { %v1776_v4 = vpack.c.bf16 %v1095_v62, %v1092_v58  ;;  %v1880_v5 = vadd.f32 %v1879_v3, %v1878_v59  ;;  %v1087_v48 = vadd.f32 %v2288_v31, %v1086_v38  ;;  %v1317_v54 = vmul.f32 %v1060_v2, %v1060_v2 }
 0x14d   : > { %v1279_v8 = vadd.f32 %v1278_v0, %v1060_v2  ;;  %v1321_v31 = vmul.f32 %v2317_v25, %v2317_v25 }
 0x14e   : > { %1792 = vst [vmem:[%s2300_s20 + $0x78] sm:$0xff] %v1776_v4   ;;  %v1063_v36 = vadd.f32 %v2312_v1, %v1880_v5  ;;  %v1771_v9 = vpack.c.bf16 %v1087_v48, %v1084_v40  ;;  %v1348_v10 = vadd.f32 %v1347_v7, %v1317_v54  ;;  %v1324_v37 = vmul.f32 %v1087_v48, %v1087_v48 }
 0x150   : > { %v1756_v12 = vpack.c.bf16 %v1063_v36, %v1060_v2  ;;  %v1280_v57 = vadd.f32 %v1279_v8, %v1063_v36  ;;  %v1318_v13 = vmul.f32 %v1063_v36, %v1063_v36  ;;  %1791 = vst [vmem:[%s2300_s20 + $0x70] sm:$0xff] %v1771_v9  }
 0x152   : > { %1788 = vst [vmem:[%s2300_s20 + $0x58] sm:$0xff] %v1756_v12   ;;  %v1281_v26 = vadd.f32 %v1280_v57, %v1068_v42  ;;  %v1349_v15 = vadd.f32 %v1348_v10, %v1318_v13  ;;  %v1325_v42 = vmul.f32 %v1092_v58, %v1092_v58 }
 0x154   : > { %v1282_v18 = vadd.f32 %v1281_v26, %v1071_v45  ;;  %v1350_v19 = vadd.f32 %v1349_v15, %v1319_v14  ;;  %v1326_v45 = vmul.f32 %v1095_v62, %v1095_v62 }
 0x156   : > { %v1351_v20 = vadd.f32 %v1350_v19, %v1320_v17  ;;  %v1283_v1 = vadd.f32 %v1282_v18, %v2317_v25 }
 0x158   : > { %v1284_v23 = vadd.f32 %v1283_v1, %v2320_v28  ;;  %v1352_v24 = vadd.f32 %v1351_v20, %v1321_v31 }
 0x15a   : > { %v1285_v33 = vadd.f32 %v1284_v23, %v1084_v40  ;;  %v1353_v34 = vadd.f32 %v1352_v24, %v1322_v22 }
 0x15c   : > { %v1286_v35 = vadd.f32 %v1285_v33, %v1087_v48  ;;  %v1354_v39 = vadd.f32 %v1353_v34, %v1323_v30 }
 0x15e   : > { %v1287_v32 = vadd.f32 %v1286_v35, %v1092_v58  ;;  %v1355_v44 = vadd.f32 %v1354_v39, %v1324_v37 }
 0x160   : > { %v1288_v16 = vadd.f32 %v1287_v32, %v1095_v62  ;;  %v1356_v25 = vadd.f32 %v1355_v44, %v1325_v42 }
 0x162   : > { %v1289_v46 = vrot.slane %v1288_v16, 4  ;;  %v1357_v21 = vadd.f32 %v1356_v25, %v1326_v45 }
 0x164   : > { %v1290_v27 = vadd.f32 %v1289_v46, %v1288_v16  ;;  %v1358_v28 = vrot.slane %v1357_v21, 4 }
 0x166   : > { %v1291_v29 = vrot.slane %v1290_v27, 2  ;;  %v1359_v47 = vadd.f32 %v1358_v28, %v1357_v21 }
 0x168   : > { %v1292_v49 = vadd.f32 %v1291_v29, %v1290_v27  ;;  %v1360_v50 = vrot.slane %v1359_v47, 2 }
 0x16a   : > { %v1293_v51 = vrot.slane %v1292_v49, 1  ;;  %v1361_v52 = vadd.f32 %v1360_v50, %v1359_v47 }
 0x16c   : > { %v1294_v6 = vadd.f32 %v1293_v51, %v1292_v49  ;;  %v1362_v53 = vrot.slane %v1361_v52, 1 }
 0x16e   : > { %v1363_v55 = vadd.f32 %v1362_v53, %v1361_v52  ;;  %1364 = vst [vmem:[%s270_s24] sm:$0xff] %v1294_v6 }
 0x170   : > { %1365 = vst [vmem:[%s277_s27] sm:$0xff] %v1363_v55 }
 0x171 PF: > { %s15_s17 = sadd.s32 1, %s2104_s17   ;;  %s2367_s15 = smov %s2100_s16 }
 0x172   : > { %p12_p6 = scmp.ge.s32.totalorder %s15_s17, 4   ;;  %s2368_s16 = smov %s2370_s18 }
 0x174   :  { %14 = sbr.rel (!%p12_p6) target bundleno = 2 (0x2), region = 85 }

</bundles_post_ra>
